<compile_context>
chip_gen: v7x
topology: tpu7x:2x2x1
jax: 0.10.0
libtpu: 0.0.40
codegen_flags: <defaults>
</compile_context>

<pallas_src>
import jax
import jax.numpy as jnp
from jax.experimental import pallas as pl
from jax.experimental.pallas import tpu as pltpu

ZDIM = 8
H1, H2, H3 = 32, 64, 128
OUT = 135
LN_EPS = 1e-5            # PyTorch nn.LayerNorm default
MAX_TB = 2048            # default max batch-tile rows per grid step
VMEM_LIMIT = 32 * 1024 * 1024


def _round_up(n, m):
    return ((n + m - 1) // m) * m


def _linear_relu_ln(h, w_ref, b_ref, g_ref, beta_ref):
    """Linear (MXU, f32 acc; input cast to the weight dtype) -> ReLU -> LayerNorm."""
    y = jnp.dot(h.astype(w_ref.dtype), w_ref[...],
                preferred_element_type=jnp.float32) + b_ref[...]
    y = jnp.maximum(y, 0.0)
    n = y.shape[-1]
    inv_n = 1.0 / n
    mean = jnp.sum(y, axis=-1, keepdims=True) * inv_n
    c = y - mean
    var = jnp.sum(c * c, axis=-1, keepdims=True) * inv_n   # biased var (torch LN)
    y = c * jax.lax.rsqrt(var + LN_EPS)
    return y * g_ref[...] + beta_ref[...]


def decoder_kernel(x_ref,
                   w1_ref, b1_ref, g1_ref, be1_ref,
                   w2_ref, b2_ref, g2_ref, be2_ref,
                   w3_ref, b3_ref, g3_ref, be3_ref,
                   wl_ref, bl_ref,
                   out_ref):
    h = x_ref[...].astype(jnp.float32)
    h = _linear_relu_ln(h, w1_ref, b1_ref, g1_ref, be1_ref)   # f32 matmul (K=8)
    h = _linear_relu_ln(h, w2_ref, b2_ref, g2_ref, be2_ref)   # f32 matmul (K=32)
    h = _linear_relu_ln(h, w3_ref, b3_ref, g3_ref, be3_ref)   # bf16 matmul (K=64)
    y = jnp.dot(h.astype(wl_ref.dtype), wl_ref[...],          # bf16 matmul (K=128)
                preferred_element_type=jnp.float32) + bl_ref[...]
    out_ref[...] = y.astype(out_ref.dtype)


def prepare_params(params, mm_dtype=jnp.bfloat16):
    """One-time (hoisted out of the forward path) casts of the large weights."""
    p = dict(params)
    p["w3"] = params["w3"].astype(mm_dtype)   # 64 x 128
    p["wl"] = params["wl"].astype(mm_dtype)   # 128 x 135
    return p


def decoder_forward(x, params, *, block_batch=MAX_TB, out_dtype=jnp.float32):
    """x: [B, ZDIM] float32 -> [B, 135] `out_dtype` (f32 default, torch-faithful)."""
    B = x.shape[0]
    # Batch tile: multiple of 8 sublanes, at least 2 grid steps when B > 8 so the
    # "parallel" batch axis can be sharded across both v7x TensorCores.
    tb = min(block_batch, _round_up(pl.cdiv(max(B, 1), 2), 8))
    b_pad = _round_up(B, tb)
    if b_pad != B:
        x = jnp.pad(x, ((0, b_pad - B), (0, 0)))
    grid = (b_pad // tb,)

    operands = (
        x,
        params["w1"], params["b1"], params["g1"], params["be1"],
        params["w2"], params["b2"], params["g2"], params["be2"],
        params["w3"], params["b3"], params["g3"], params["be3"],
        params["wl"], params["bl"],
    )

    x_spec = pl.BlockSpec((tb, ZDIM), lambda i: (i, 0))
    const_spec = lambda a: pl.BlockSpec(a.shape, lambda i: (0, 0))  # VMEM-resident
    in_specs = [x_spec] + [const_spec(a) for a in operands[1:]]
    # Output block is lane-narrow (135 == full last dim of the output array):
    # this trades a masked vst on the second lane tile for ~2x less HBM
    # writeback, which wins because the kernel is HBM-write bound.
    out_spec = pl.BlockSpec((tb, OUT), lambda i: (i, 0))

    flops = 2 * b_pad * (ZDIM * H1 + H1 * H2 + H2 * H3 + H3 * OUT)
    bytes_accessed = (
        b_pad * ZDIM * 4                                              # input
        + b_pad * OUT * jnp.dtype(out_dtype).itemsize                 # output
        + sum(int(a.size) * a.dtype.itemsize for a in operands[1:])   # params
    )
    cost = pl.CostEstimate(flops=flops,
                           transcendentals=3 * b_pad,   # one rsqrt per LN per row
                           bytes_accessed=bytes_accessed)

    out = pl.pallas_call(
        decoder_kernel,
        out_shape=jax.ShapeDtypeStruct((b_pad, OUT), out_dtype),
        grid=grid,
        in_specs=in_specs,
        out_specs=out_spec,
        compiler_params=pltpu.CompilerParams(
            dimension_semantics=("parallel",),        # v7x: shard batch over 2 TCs
            vmem_limit_bytes=VMEM_LIMIT),
        cost_estimate=cost,
    )(*operands)
    return out if b_pad == B else out[:B]


def init_params(key):
    """Deterministic synthetic parameters matching the PyTorch module's shapes.

    Linear weights are stored transposed: [in, out]. Biases and LayerNorm
    affine parameters are stored as [1, features].
    """
    ks = jax.random.split(key, 8)

    def w(k, fin, fout):
        return jax.random.normal(k, (fin, fout), jnp.float32) * (1.0 / jnp.sqrt(fin))

    def b(k, fout):
        return jax.random.normal(k, (1, fout), jnp.float32) * 0.01

    return {
        "w1": w(ks[0], ZDIM, H1), "b1": b(ks[1], H1),
        "g1": jnp.ones((1, H1), jnp.float32), "be1": jnp.zeros((1, H1), jnp.float32),
        "w2": w(ks[2], H1, H2), "b2": b(ks[3], H2),
        "g2": jnp.ones((1, H2), jnp.float32), "be2": jnp.zeros((1, H2), jnp.float32),
        "w3": w(ks[4], H2, H3), "b3": b(ks[5], H3),
        "g3": jnp.ones((1, H3), jnp.float32), "be3": jnp.zeros((1, H3), jnp.float32),
        "wl": w(ks[6], H3, OUT), "bl": b(ks[7], OUT),
    }


def decoder_reference(x, p):
    """Pure-JAX reference mirroring the PyTorch forward.

    Matmul inputs are cast to each weight's dtype, so passing the raw f32
    params gives the torch-faithful f32 reference, and passing
    prepare_params(...) mirrors the kernel's mixed precision exactly.
    """
    def blk(h, w, b, g, be):
        h = jnp.dot(h.astype(w.dtype), w, preferred_element_type=jnp.float32) + b
        h = jnp.maximum(h, 0.0)
        mean = jnp.mean(h, axis=-1, keepdims=True)
        c = h - mean
        var = jnp.mean(c * c, axis=-1, keepdims=True)
        return (c * jax.lax.rsqrt(var + LN_EPS)) * g + be

    h = blk(x.astype(jnp.float32), p["w1"], p["b1"], p["g1"], p["be1"])
    h = blk(h, p["w2"], p["b2"], p["g2"], p["be2"])
    h = blk(h, p["w3"], p["b3"], p["g3"], p["be3"])
    return jnp.dot(h.astype(p["wl"].dtype), p["wl"],
                   preferred_element_type=jnp.float32) + p["bl"]


if __name__ == "__main__":
    key = jax.random.PRNGKey(0)
    kx, kp = jax.random.split(key)

    B = 200  # deliberately not a multiple of 8 * anything nice (exercises padding)
    x = jax.random.normal(kx, (B, ZDIM), jnp.float32)
    raw_params = init_params(kp)
    params = prepare_params(raw_params)        # hoisted bf16 casts (w3, wl)

    # Default tiling: tb = 104, grid = (2,) -> exercises a multi-step pipelined grid.
    out = decoder_forward(x, params)
    out = jax.block_until_ready(out)
    assert out.shape == (B, OUT), out.shape

    # Also exercise a smaller tile / longer grid.
    out_small = jax.block_until_ready(decoder_forward(x, params, block_batch=64))
    assert jnp.allclose(out, out_small, atol=1e-5, rtol=1e-5)

    # 1) Tight check against a reference mirroring the kernel's mixed precision.
    ref_mixed = decoder_reference(x, params)
    assert jnp.allclose(out, ref_mixed, atol=2e-3, rtol=2e-3), float(
        jnp.max(jnp.abs(out - ref_mixed)))

    # 2) Sanity check against the torch-faithful f32 reference (bf16 error bound,
    #    only the last two matmuls are bf16 now).
    ref_f32 = decoder_reference(x, raw_params)
    assert jnp.allclose(out, ref_f32, atol=5e-2, rtol=5e-2), float(
        jnp.max(jnp.abs(out - ref_f32)))

    print("KERNEL_OK")
</pallas_src>

<mosaic_0001>
module attributes {stable_mosaic.version = 11 : i64} {
  func.func @decoder_kernel(%arg0: i32, %arg1: memref<104x8xf32, #tpu.memory_space<vmem>>, %arg2: memref<8x32xf32, #tpu.memory_space<vmem>>, %arg3: memref<1x32xf32, #tpu.memory_space<vmem>>, %arg4: memref<1x32xf32, #tpu.memory_space<vmem>>, %arg5: memref<1x32xf32, #tpu.memory_space<vmem>>, %arg6: memref<32x64xf32, #tpu.memory_space<vmem>>, %arg7: memref<1x64xf32, #tpu.memory_space<vmem>>, %arg8: memref<1x64xf32, #tpu.memory_space<vmem>>, %arg9: memref<1x64xf32, #tpu.memory_space<vmem>>, %arg10: memref<64x128xbf16, #tpu.memory_space<vmem>>, %arg11: memref<1x128xf32, #tpu.memory_space<vmem>>, %arg12: memref<1x128xf32, #tpu.memory_space<vmem>>, %arg13: memref<1x128xf32, #tpu.memory_space<vmem>>, %arg14: memref<128x135xbf16, #tpu.memory_space<vmem>>, %arg15: memref<1x135xf32, #tpu.memory_space<vmem>>, %arg16: memref<104x135xf32, #tpu.memory_space<vmem>>) attributes {dimension_semantics = [#tpu.dimension_semantics<parallel>], iteration_bounds = array<i64: 2>, scalar_prefetch = 0 : i64, scratch_operands = 0 : i64, tpu.core_type = #tpu.core_type<tc>, window_params = [{transform_indices = @transform_0, window_bounds = array<i64: 104, 8>}, {pipeline_mode = #tpu.pipeline_mode<synchronous>, transform_indices = @transform_1, window_bounds = array<i64: 8, 32>}, {pipeline_mode = #tpu.pipeline_mode<synchronous>, transform_indices = @transform_2, window_bounds = array<i64: 1, 32>}, {pipeline_mode = #tpu.pipeline_mode<synchronous>, transform_indices = @transform_3, window_bounds = array<i64: 1, 32>}, {pipeline_mode = #tpu.pipeline_mode<synchronous>, transform_indices = @transform_4, window_bounds = array<i64: 1, 32>}, {pipeline_mode = #tpu.pipeline_mode<synchronous>, transform_indices = @transform_5, window_bounds = array<i64: 32, 64>}, {pipeline_mode = #tpu.pipeline_mode<synchronous>, transform_indices = @transform_6, window_bounds = array<i64: 1, 64>}, {pipeline_mode = #tpu.pipeline_mode<synchronous>, transform_indices = @transform_7, window_bounds = array<i64: 1, 64>}, {pipeline_mode = #tpu.pipeline_mode<synchronous>, transform_indices = @transform_8, window_bounds = array<i64: 1, 64>}, {pipeline_mode = #tpu.pipeline_mode<synchronous>, transform_indices = @transform_9, window_bounds = array<i64: 64, 128>}, {pipeline_mode = #tpu.pipeline_mode<synchronous>, transform_indices = @transform_10, window_bounds = array<i64: 1, 128>}, {pipeline_mode = #tpu.pipeline_mode<synchronous>, transform_indices = @transform_11, window_bounds = array<i64: 1, 128>}, {pipeline_mode = #tpu.pipeline_mode<synchronous>, transform_indices = @transform_12, window_bounds = array<i64: 1, 128>}, {pipeline_mode = #tpu.pipeline_mode<synchronous>, transform_indices = @transform_13, window_bounds = array<i64: 128, 135>}, {pipeline_mode = #tpu.pipeline_mode<synchronous>, transform_indices = @transform_14, window_bounds = array<i64: 1, 135>}, {transform_indices = @transform_15, window_bounds = array<i64: 104, 135>}]} {
    %c0 = arith.constant 0 : index
    %c0_0 = arith.constant 0 : index
    %0 = vector.load %arg1[%c0, %c0_0] : memref<104x8xf32, #tpu.memory_space<vmem>>, vector<104x8xf32>
    %c0_1 = arith.constant 0 : index
    %c0_2 = arith.constant 0 : index
    %1 = vector.load %arg2[%c0_1, %c0_2] : memref<8x32xf32, #tpu.memory_space<vmem>>, vector<8x32xf32>
    %cst = arith.constant dense<0.000000e+00> : vector<104x32xf32>
    %2 = tpu.matmul %0, %1, %cst {dimension_numbers = #tpu.dot_dimension_numbers<[1], [0], [0], [1], [0, 0, 1, 1], [], []>} : vector<104x8xf32>, vector<8x32xf32>, vector<104x32xf32> -> vector<104x32xf32>
    %c0_3 = arith.constant 0 : index
    %c0_4 = arith.constant 0 : index
    %3 = vector.load %arg3[%c0_3, %c0_4] : memref<1x32xf32, #tpu.memory_space<vmem>>, vector<1x32xf32>
    %4 = vector.broadcast %3 : vector<1x32xf32> to vector<104x32xf32>
    %5 = arith.addf %2, %4 : vector<104x32xf32>
    %cst_5 = arith.constant 0.000000e+00 : f32
    %6 = vector.broadcast %cst_5 : f32 to vector<104x32xf32>
    %7 = arith.maximumf %5, %6 : vector<104x32xf32>
    %cst_6 = arith.constant dense<0.000000e+00> : vector<104xf32>
    %8 = vector.multi_reduction <add>, %7, %cst_6 [1] : vector<104x32xf32> to vector<104xf32>
    %9 = vector.shape_cast %8 : vector<104xf32> to vector<104x1xf32>
    %cst_7 = arith.constant 3.125000e-02 : f32
    %10 = vector.broadcast %cst_7 : f32 to vector<104x1xf32>
    %11 = arith.mulf %9, %10 : vector<104x1xf32>
    %12 = vector.broadcast %11 : vector<104x1xf32> to vector<104x32xf32>
    %13 = arith.subf %7, %12 : vector<104x32xf32>
    %14 = arith.mulf %13, %13 : vector<104x32xf32>
    %cst_8 = arith.constant dense<0.000000e+00> : vector<104xf32>
    %15 = vector.multi_reduction <add>, %14, %cst_8 [1] : vector<104x32xf32> to vector<104xf32>
    %16 = vector.shape_cast %15 : vector<104xf32> to vector<104x1xf32>
    %cst_9 = arith.constant 3.125000e-02 : f32
    %17 = vector.broadcast %cst_9 : f32 to vector<104x1xf32>
    %18 = arith.mulf %16, %17 : vector<104x1xf32>
    %cst_10 = arith.constant 9.99999974E-6 : f32
    %19 = vector.broadcast %cst_10 : f32 to vector<104x1xf32>
    %20 = arith.addf %18, %19 : vector<104x1xf32>
    %21 = math.rsqrt %20 : vector<104x1xf32>
    %22 = vector.broadcast %21 : vector<104x1xf32> to vector<104x32xf32>
    %23 = arith.mulf %13, %22 : vector<104x32xf32>
    %c0_11 = arith.constant 0 : index
    %c0_12 = arith.constant 0 : index
    %24 = vector.load %arg4[%c0_11, %c0_12] : memref<1x32xf32, #tpu.memory_space<vmem>>, vector<1x32xf32>
    %25 = vector.broadcast %24 : vector<1x32xf32> to vector<104x32xf32>
    %26 = arith.mulf %23, %25 : vector<104x32xf32>
    %c0_13 = arith.constant 0 : index
    %c0_14 = arith.constant 0 : index
    %27 = vector.load %arg5[%c0_13, %c0_14] : memref<1x32xf32, #tpu.memory_space<vmem>>, vector<1x32xf32>
    %28 = vector.broadcast %27 : vector<1x32xf32> to vector<104x32xf32>
    %29 = arith.addf %26, %28 : vector<104x32xf32>
    %c0_15 = arith.constant 0 : index
    %c0_16 = arith.constant 0 : index
    %30 = vector.load %arg6[%c0_15, %c0_16] : memref<32x64xf32, #tpu.memory_space<vmem>>, vector<32x64xf32>
    %cst_17 = arith.constant dense<0.000000e+00> : vector<104x64xf32>
    %31 = tpu.matmul %29, %30, %cst_17 {dimension_numbers = #tpu.dot_dimension_numbers<[1], [0], [0], [1], [0, 0, 1, 1], [], []>} : vector<104x32xf32>, vector<32x64xf32>, vector<104x64xf32> -> vector<104x64xf32>
    %c0_18 = arith.constant 0 : index
    %c0_19 = arith.constant 0 : index
    %32 = vector.load %arg7[%c0_18, %c0_19] : memref<1x64xf32, #tpu.memory_space<vmem>>, vector<1x64xf32>
    %33 = vector.broadcast %32 : vector<1x64xf32> to vector<104x64xf32>
    %34 = arith.addf %31, %33 : vector<104x64xf32>
    %cst_20 = arith.constant 0.000000e+00 : f32
    %35 = vector.broadcast %cst_20 : f32 to vector<104x64xf32>
    %36 = arith.maximumf %34, %35 : vector<104x64xf32>
    %cst_21 = arith.constant dense<0.000000e+00> : vector<104xf32>
    %37 = vector.multi_reduction <add>, %36, %cst_21 [1] : vector<104x64xf32> to vector<104xf32>
    %38 = vector.shape_cast %37 : vector<104xf32> to vector<104x1xf32>
    %cst_22 = arith.constant 1.562500e-02 : f32
    %39 = vector.broadcast %cst_22 : f32 to vector<104x1xf32>
    %40 = arith.mulf %38, %39 : vector<104x1xf32>
    %41 = vector.broadcast %40 : vector<104x1xf32> to vector<104x64xf32>
    %42 = arith.subf %36, %41 : vector<104x64xf32>
    %43 = arith.mulf %42, %42 : vector<104x64xf32>
    %cst_23 = arith.constant dense<0.000000e+00> : vector<104xf32>
    %44 = vector.multi_reduction <add>, %43, %cst_23 [1] : vector<104x64xf32> to vector<104xf32>
    %45 = vector.shape_cast %44 : vector<104xf32> to vector<104x1xf32>
    %cst_24 = arith.constant 1.562500e-02 : f32
    %46 = vector.broadcast %cst_24 : f32 to vector<104x1xf32>
    %47 = arith.mulf %45, %46 : vector<104x1xf32>
    %cst_25 = arith.constant 9.99999974E-6 : f32
    %48 = vector.broadcast %cst_25 : f32 to vector<104x1xf32>
    %49 = arith.addf %47, %48 : vector<104x1xf32>
    %50 = math.rsqrt %49 : vector<104x1xf32>
    %51 = vector.broadcast %50 : vector<104x1xf32> to vector<104x64xf32>
    %52 = arith.mulf %42, %51 : vector<104x64xf32>
    %c0_26 = arith.constant 0 : index
    %c0_27 = arith.constant 0 : index
    %53 = vector.load %arg8[%c0_26, %c0_27] : memref<1x64xf32, #tpu.memory_space<vmem>>, vector<1x64xf32>
    %54 = vector.broadcast %53 : vector<1x64xf32> to vector<104x64xf32>
    %55 = arith.mulf %52, %54 : vector<104x64xf32>
    %c0_28 = arith.constant 0 : index
    %c0_29 = arith.constant 0 : index
    %56 = vector.load %arg9[%c0_28, %c0_29] : memref<1x64xf32, #tpu.memory_space<vmem>>, vector<1x64xf32>
    %57 = vector.broadcast %56 : vector<1x64xf32> to vector<104x64xf32>
    %58 = arith.addf %55, %57 : vector<104x64xf32>
    %59 = arith.truncf %58 : vector<104x64xf32> to vector<104x64xbf16>
    %c0_30 = arith.constant 0 : index
    %c0_31 = arith.constant 0 : index
    %60 = vector.load %arg10[%c0_30, %c0_31] : memref<64x128xbf16, #tpu.memory_space<vmem>>, vector<64x128xbf16>
    %cst_32 = arith.constant dense<0.000000e+00> : vector<104x128xf32>
    %61 = tpu.matmul %59, %60, %cst_32 {dimension_numbers = #tpu.dot_dimension_numbers<[1], [0], [0], [1], [0, 0, 1, 1], [], []>} : vector<104x64xbf16>, vector<64x128xbf16>, vector<104x128xf32> -> vector<104x128xf32>
    %c0_33 = arith.constant 0 : index
    %c0_34 = arith.constant 0 : index
    %62 = vector.load %arg11[%c0_33, %c0_34] : memref<1x128xf32, #tpu.memory_space<vmem>>, vector<1x128xf32>
    %63 = vector.broadcast %62 : vector<1x128xf32> to vector<104x128xf32>
    %64 = arith.addf %61, %63 : vector<104x128xf32>
    %cst_35 = arith.constant 0.000000e+00 : f32
    %65 = vector.broadcast %cst_35 : f32 to vector<104x128xf32>
    %66 = arith.maximumf %64, %65 : vector<104x128xf32>
    %cst_36 = arith.constant dense<0.000000e+00> : vector<104xf32>
    %67 = vector.multi_reduction <add>, %66, %cst_36 [1] : vector<104x128xf32> to vector<104xf32>
    %68 = vector.shape_cast %67 : vector<104xf32> to vector<104x1xf32>
    %cst_37 = arith.constant 7.812500e-03 : f32
    %69 = vector.broadcast %cst_37 : f32 to vector<104x1xf32>
    %70 = arith.mulf %68, %69 : vector<104x1xf32>
    %71 = vector.broadcast %70 : vector<104x1xf32> to vector<104x128xf32>
    %72 = arith.subf %66, %71 : vector<104x128xf32>
    %73 = arith.mulf %72, %72 : vector<104x128xf32>
    %cst_38 = arith.constant dense<0.000000e+00> : vector<104xf32>
    %74 = vector.multi_reduction <add>, %73, %cst_38 [1] : vector<104x128xf32> to vector<104xf32>
    %75 = vector.shape_cast %74 : vector<104xf32> to vector<104x1xf32>
    %cst_39 = arith.constant 7.812500e-03 : f32
    %76 = vector.broadcast %cst_39 : f32 to vector<104x1xf32>
    %77 = arith.mulf %75, %76 : vector<104x1xf32>
    %cst_40 = arith.constant 9.99999974E-6 : f32
    %78 = vector.broadcast %cst_40 : f32 to vector<104x1xf32>
    %79 = arith.addf %77, %78 : vector<104x1xf32>
    %80 = math.rsqrt %79 : vector<104x1xf32>
    %81 = vector.broadcast %80 : vector<104x1xf32> to vector<104x128xf32>
    %82 = arith.mulf %72, %81 : vector<104x128xf32>
    %c0_41 = arith.constant 0 : index
    %c0_42 = arith.constant 0 : index
    %83 = vector.load %arg12[%c0_41, %c0_42] : memref<1x128xf32, #tpu.memory_space<vmem>>, vector<1x128xf32>
    %84 = vector.broadcast %83 : vector<1x128xf32> to vector<104x128xf32>
    %85 = arith.mulf %82, %84 : vector<104x128xf32>
    %c0_43 = arith.constant 0 : index
    %c0_44 = arith.constant 0 : index
    %86 = vector.load %arg13[%c0_43, %c0_44] : memref<1x128xf32, #tpu.memory_space<vmem>>, vector<1x128xf32>
    %87 = vector.broadcast %86 : vector<1x128xf32> to vector<104x128xf32>
    %88 = arith.addf %85, %87 : vector<104x128xf32>
    %89 = arith.truncf %88 : vector<104x128xf32> to vector<104x128xbf16>
    %c0_45 = arith.constant 0 : index
    %c0_46 = arith.constant 0 : index
    %90 = vector.load %arg14[%c0_45, %c0_46] : memref<128x135xbf16, #tpu.memory_space<vmem>>, vector<128x135xbf16>
    %cst_47 = arith.constant dense<0.000000e+00> : vector<104x135xf32>
    %91 = tpu.matmul %89, %90, %cst_47 {dimension_numbers = #tpu.dot_dimension_numbers<[1], [0], [0], [1], [0, 0, 1, 1], [], []>} : vector<104x128xbf16>, vector<128x135xbf16>, vector<104x135xf32> -> vector<104x135xf32>
    %c0_48 = arith.constant 0 : index
    %c0_49 = arith.constant 0 : index
    %92 = vector.load %arg15[%c0_48, %c0_49] : memref<1x135xf32, #tpu.memory_space<vmem>>, vector<1x135xf32>
    %93 = vector.broadcast %92 : vector<1x135xf32> to vector<104x135xf32>
    %94 = arith.addf %91, %93 : vector<104x135xf32>
    %c0_50 = arith.constant 0 : index
    %c0_51 = arith.constant 0 : index
    %95 = vector.load %arg16[%c0_50, %c0_51] : memref<104x135xf32, #tpu.memory_space<vmem>>, vector<104x135xf32>
    tpu.vector_store %arg16[%c0_50, %c0_51], %94 {strides = array<i32>} : memref<104x135xf32, #tpu.memory_space<vmem>>, vector<104x135xf32>,
    return
  }
  func.func @transform_0(%arg0: i32) -> (i32, i32) {
    %c0_i32 = arith.constant 0 : i32
    %c0_i32_0 = arith.constant 0 : i32
    return %arg0, %c0_i32 : i32, i32
  }
  func.func @transform_1(%arg0: i32) -> (i32, i32) {
    %c0_i32 = arith.constant 0 : i32
    %c0_i32_0 = arith.constant 0 : i32
    %c0_i32_1 = arith.constant 0 : i32
    return %c0_i32, %c0_i32_0 : i32, i32
  }
  func.func @transform_2(%arg0: i32) -> (i32, i32) {
    %c0_i32 = arith.constant 0 : i32
    %c0_i32_0 = arith.constant 0 : i32
    %c0_i32_1 = arith.constant 0 : i32
    return %c0_i32, %c0_i32_0 : i32, i32
  }
  func.func @transform_3(%arg0: i32) -> (i32, i32) {
    %c0_i32 = arith.constant 0 : i32
    %c0_i32_0 = arith.constant 0 : i32
    %c0_i32_1 = arith.constant 0 : i32
    return %c0_i32, %c0_i32_0 : i32, i32
  }
  func.func @transform_4(%arg0: i32) -> (i32, i32) {
    %c0_i32 = arith.constant 0 : i32
    %c0_i32_0 = arith.constant 0 : i32
    %c0_i32_1 = arith.constant 0 : i32
    return %c0_i32, %c0_i32_0 : i32, i32
  }
  func.func @transform_5(%arg0: i32) -> (i32, i32) {
    %c0_i32 = arith.constant 0 : i32
    %c0_i32_0 = arith.constant 0 : i32
    %c0_i32_1 = arith.constant 0 : i32
    return %c0_i32, %c0_i32_0 : i32, i32
  }
  func.func @transform_6(%arg0: i32) -> (i32, i32) {
    %c0_i32 = arith.constant 0 : i32
    %c0_i32_0 = arith.constant 0 : i32
    %c0_i32_1 = arith.constant 0 : i32
    return %c0_i32, %c0_i32_0 : i32, i32
  }
  func.func @transform_7(%arg0: i32) -> (i32, i32) {
    %c0_i32 = arith.constant 0 : i32
    %c0_i32_0 = arith.constant 0 : i32
    %c0_i32_1 = arith.constant 0 : i32
    return %c0_i32, %c0_i32_0 : i32, i32
  }
  func.func @transform_8(%arg0: i32) -> (i32, i32) {
    %c0_i32 = arith.constant 0 : i32
    %c0_i32_0 = arith.constant 0 : i32
    %c0_i32_1 = arith.constant 0 : i32
    return %c0_i32, %c0_i32_0 : i32, i32
  }
  func.func @transform_9(%arg0: i32) -> (i32, i32) {
    %c0_i32 = arith.constant 0 : i32
    %c0_i32_0 = arith.constant 0 : i32
    %c0_i32_1 = arith.constant 0 : i32
    return %c0_i32, %c0_i32_0 : i32, i32
  }
  func.func @transform_10(%arg0: i32) -> (i32, i32) {
    %c0_i32 = arith.constant 0 : i32
    %c0_i32_0 = arith.constant 0 : i32
    %c0_i32_1 = arith.constant 0 : i32
    return %c0_i32, %c0_i32_0 : i32, i32
  }
  func.func @transform_11(%arg0: i32) -> (i32, i32) {
    %c0_i32 = arith.constant 0 : i32
    %c0_i32_0 = arith.constant 0 : i32
    %c0_i32_1 = arith.constant 0 : i32
    return %c0_i32, %c0_i32_0 : i32, i32
  }
  func.func @transform_12(%arg0: i32) -> (i32, i32) {
    %c0_i32 = arith.constant 0 : i32
    %c0_i32_0 = arith.constant 0 : i32
    %c0_i32_1 = arith.constant 0 : i32
    return %c0_i32, %c0_i32_0 : i32, i32
  }
  func.func @transform_13(%arg0: i32) -> (i32, i32) {
    %c0_i32 = arith.constant 0 : i32
    %c0_i32_0 = arith.constant 0 : i32
    %c0_i32_1 = arith.constant 0 : i32
    return %c0_i32, %c0_i32_0 : i32, i32
  }
  func.func @transform_14(%arg0: i32) -> (i32, i32) {
    %c0_i32 = arith.constant 0 : i32
    %c0_i32_0 = arith.constant 0 : i32
    %c0_i32_1 = arith.constant 0 : i32
    return %c0_i32, %c0_i32_0 : i32, i32
  }
  func.func @transform_15(%arg0: i32) -> (i32, i32) {
    %c0_i32 = arith.constant 0 : i32
    %c0_i32_0 = arith.constant 0 : i32
    return %arg0, %c0_i32 : i32, i32
  }
}

</mosaic_0001>

<bundles_post_ra>
// kernel: tpu_custom_call.1
= control target key start
LH: loop header
LB: loop body
LE: loop exit
PB: predicated region body
PF: predicated region fallthrough
CT: control target
= control target key end

     0   :  { %s2425_s18 = smov 0   ;;  %s3388_s0 = inlined_call_operand.vmem [shape: f32[208,8], index: 0, kind: input, shape index: {}]   ;;  %s3389_s1 = inlined_call_operand.vmem [shape: f32[8,32], index: 1, kind: input, shape index: {}]   ;;  %s3390_s2 = inlined_call_operand.vmem [shape: f32[1,32], index: 2, kind: input, shape index: {}]   ;;  %s3391_s3 = inlined_call_operand.vmem [shape: f32[1,32], index: 3, kind: input, shape index: {}]   ;;  %s3392_s4 = inlined_call_operand.vmem [shape: f32[1,32], index: 4, kind: input, shape index: {}]   ;;  %s3393_s5 = inlined_call_operand.vmem [shape: f32[32,64], index: 5, kind: input, shape index: {}]   ;;  %s3394_s6 = inlined_call_operand.vmem [shape: f32[1,64], index: 6, kind: input, shape index: {}]   ;;  %s3395_s7 = inlined_call_operand.vmem [shape: f32[1,64], index: 7, kind: input, shape index: {}]   ;;  %s3396_s8 = inlined_call_operand.vmem [shape: f32[1,64], index: 8, kind: input, shape index: {}]   ;;  %s3397_s9 = inlined_call_operand.vmem [shape: bf16[64,128], index: 9, kind: input, shape index: {}]   ;;  %s3398_s10 = inlined_call_operand.vmem [shape: f32[1,128], index: 10, kind: input, shape index: {}]   ;;  %s3399_s11 = inlined_call_operand.vmem [shape: f32[1,128], index: 11, kind: input, shape index: {}]   ;;  %s3400_s12 = inlined_call_operand.vmem [shape: f32[1,128], index: 12, kind: input, shape index: {}]   ;;  %s3401_s13 = inlined_call_operand.vmem [shape: bf16[128,135], index: 13, kind: input, shape index: {}]   ;;  %s3402_s14 = inlined_call_operand.vmem [shape: f32[1,135], index: 14, kind: input, shape index: {}]   ;;  %s3403_s15 = inlined_call_operand.vmem [shape: f32[208,135], index: 15, kind: output, shape index: {}]  }
   0x1 LB: > { %s1970_s19 = sadd.s32 4294967295, %s2339_s18   ;;  %p1974_p0 = scmp.ge.s32.totalorder %s2339_s18, 1  ;;  %s2339_s18 = sphi %s2425_s18, %s25_s18  }
   0x2   : > { %p438_p1 = scmp.lt.s32.totalorder %s2339_s18, 3 }
   0x4   : > { %p439_p2 = pnand %p1974_p0, %p438_p1 }
   0x5   : > { %v514_v0 = vld [vmem:[%s3389_s1] sm:$0xff] (!%p439_p2)  ;;  %s487_s22 = smul.u32 (!%p439_p2), 13, %s1970_s19  ;;  %v2341_v1 = vmov (!%p439_p2), 0.0   ;;  %vm2342_vm0 = vmmov (!%p439_p2), 0   ;;  %vm522_vm1 = vcmask (!%p439_p2), 64512   ;;  %vm705_vm2 = vcmask (!%p439_p2), 261120  }
   0x6   : > { %442 = sbr.rel (%p439_p2) target bundleno = 1876 (0x754), region = 80  ;;  %2085 = vmatprep.subr.mxu0 (!%p439_p2), %v2341_v1  ;;  %2087 = vmatprep.mubr.msk.f32.mxu0 (!%p439_p2), %vm2342_vm0, %v2341_v1  ;;  %v2505_v15 = vld [vmem:[%s3390_s2] ss:$0 sm:$0xff] (!%p439_p2)  ;;  %vm1108_vm3 = vcmask (!%p439_p2), 523264   ;;  %vm1886_vm4 = vcmask (!%p439_p2), 56320  }
   0x7   : > { %2086 = vmatpush3.msra.mxu0 (!%p439_p2), %v514_v0  ;;  %p488_p3 = scmp.lt.s32.totalorder (!%p439_p2), %s487_s22, 25  ;;  %2134 = vmatprep.mubr.msk.f32.mxu1 (!%p439_p2), %vm2342_vm0, %v2341_v1 }
   0x8   : > { %2173 = vmatprep.subr.bf16.mxu0 (!%p439_p2), %v2341_v1 }
   0xd   : > { %s3405_s22 = smov (!%p488_p3, %s487_s22), 25 }
   0xe   : > { %s1975_s23 = sshll.u32 %s3405_s22, 3  ;;  %s2042_s30 = sshll.u32 %s3405_s22, 4 }
   0xf   : > { %s2448_s26 = scalar_lea.vmem %s3388_s0, %s1975_s23  ;;  %s3318_s19 = scalar_lea.vmem %s3403_s15, %s2042_s30 }
  0x10   : > { %v501_v2 = vld [vmem:[%s2448_s26] sm:$0xff]  ;;  %v502_v3 = vld [vmem:[%s2448_s26 + $0x8] sm:$0xff]  ;;  %v503_v4 = vld [vmem:[%s2448_s26 + $0x10] sm:$0xff] }
  0x11   : > { %2088 = vmatmul.mubr.msk.f32.vlgmr.msra.gmra.mrb[0].mxu0 %vm522_vm1, %v501_v2  ;;  %v504_v5 = vld [vmem:[%s2448_s26 + $0x18] sm:$0xff]  ;;  %v505_v6 = vld [vmem:[%s2448_s26 + $0x20] sm:$0xff]  ;;  %v506_v7 = vld [vmem:[%s2448_s26 + $0x28] sm:$0xff] }
  0x12   : > { %2090 = vmatprep.mubr.msk.f32.mxu0 %vm2342_vm0, %v2341_v1  ;;  %v507_v8 = vld [vmem:[%s2448_s26 + $0x30] sm:$0xff]  ;;  %v508_v9 = vld [vmem:[%s2448_s26 + $0x38] sm:$0xff]  ;;  %v509_v10 = vld [vmem:[%s2448_s26 + $0x40] sm:$0xff] }
  0x13   : > { %v510_v11 = vld [vmem:[%s2448_s26 + $0x48] sm:$0xff]  ;;  %v511_v12 = vld [vmem:[%s2448_s26 + $0x50] sm:$0xff]  ;;  %v512_v13 = vld [vmem:[%s2448_s26 + $0x58] sm:$0xff] }
  0x14   : > { %v513_v14 = vld [vmem:[%s2448_s26 + $0x60] sm:$0xff] }
  0x15   : > { %2091 = vmatmul.mubr.msk.f32.gmra.mrb[2].mxu0 %vm522_vm1, %v502_v3 }
  0x16   : > { %2093 = vmatprep.mubr.msk.f32.mxu0 %vm2342_vm0, %v2341_v1 }
  0x19   : > { %2094 = vmatmul.mubr.msk.f32.gmra.mrb[4].mxu0 %vm522_vm1, %v503_v4 }
  0x1a   : > { %2096 = vmatprep.mubr.msk.f32.mxu0 %vm2342_vm0, %v2341_v1 }
  0x1d   : > { %2097 = vmatmul.mubr.msk.f32.gmra.mrb[6].mxu0 %vm522_vm1, %v504_v5 }
  0x1e   : > { %2099 = vmatprep.mubr.msk.f32.mxu0 %vm2342_vm0, %v2341_v1 }
  0x21   : > { %2100 = vmatmul.mubr.msk.f32.gmra.mrb[8].mxu0 %vm522_vm1, %v505_v6 }
  0x22   : > { %2102 = vmatprep.mubr.msk.f32.mxu0 %vm2342_vm0, %v2341_v1 }
  0x25   : > { %2103 = vmatmul.mubr.msk.f32.gmra.mrb[10].mxu0 %vm522_vm1, %v506_v7 }
  0x26   : > { %2105 = vmatprep.mubr.msk.f32.mxu0 %vm2342_vm0, %v2341_v1 }
  0x29   : > { %2106 = vmatmul.mubr.msk.f32.gmra.mrb[12].mxu0 %vm522_vm1, %v507_v8 }
  0x2a   : > { %2108 = vmatprep.mubr.msk.f32.mxu0 %vm2342_vm0, %v2341_v1 }
  0x2d   : > { %2109 = vmatmul.mubr.msk.f32.gmra.mrb[14].mxu0 %vm522_vm1, %v508_v9 }
  0x2e   : > { %2111 = vmatprep.mubr.msk.f32.mxu0 %vm2342_vm0, %v2341_v1 }
  0x31   : > { %2112 = vmatmul.mubr.msk.f32.gmra.mrb[16].mxu0 %vm522_vm1, %v509_v10 }
  0x32   : > { %2114 = vmatprep.mubr.msk.f32.mxu0 %vm2342_vm0, %v2341_v1 }
  0x35   : > { %2115 = vmatmul.mubr.msk.f32.gmra.mrb[18].mxu0 %vm522_vm1, %v510_v11 }
  0x36   : > { %2117 = vmatprep.mubr.msk.f32.mxu0 %vm2342_vm0, %v2341_v1 }
  0x39   : > { %2118 = vmatmul.mubr.msk.f32.gmra.mrb[20].mxu0 %vm522_vm1, %v511_v12 }
  0x3a   : > { %2120 = vmatprep.mubr.msk.f32.mxu0 %vm2342_vm0, %v2341_v1 }
  0x3d   : > { %2121 = vmatmul.mubr.msk.f32.gmra.mrb[22].mxu0 %vm522_vm1, %v512_v13 }
  0x3e   : > { %2123 = vmatprep.mubr.msk.f32.mxu0 %vm2342_vm0, %v2341_v1 }
  0x41   : > { %2124 = vmatmul.mubr.msk.f32.gmra.mrb[24].mxu0 %vm522_vm1, %v513_v14 }
  0x42   : > { %2181 = vmatprep.mubr.msk.bf16.mxu0 %vm2342_vm0, %v2341_v1 }
  0xe4   : > { %v628_v16 = vpop.f32.mrb[0].mxu0 }
  0xe5   : > { %v2508_v17 = vadd.f32 %v2505_v15, %v628_v16  ;;  %v2089_v18 = vpop.f32.mrb[1].mxu0 }
  0xe7   : > { %v692_v19 = vmax.f32 %v2508_v17, 0.0 }
  0xe8   : > { %v633_v20 = vpop.f32.mrb[2].mxu0 }
  0xe9   : > { %v2512_v21 = vadd.f32 %v2505_v15, %v633_v20  ;;  %v2092_v22 = vpop.f32.mrb[3].mxu0  ;;  %v706_v23 = vsel %vm705_vm2, %v692_v19, 0.0 }
  0xea   : > { %707 = vadd.xlane.f32.xlu0 %v706_v23 }
  0xeb   : > { %v693_v24 = vmax.f32 %v2512_v21, 0.0 }
  0xec   : > { %v638_v25 = vpop.f32.mrb[4].mxu0 }
  0xed   : > { %v2519_v26 = vadd.f32 %v2505_v15, %v638_v25  ;;  %v2095_v27 = vpop.f32.mrb[5].mxu0  ;;  %v709_v28 = vsel %vm705_vm2, %v693_v24, 0.0 }
  0xee   : > { %710 = vadd.xlane.f32.xlu0 %v709_v28 }
  0xef   : > { %v694_v29 = vmax.f32 %v2519_v26, 0.0 }
  0xf0   : > { %v643_v30 = vpop.f32.mrb[6].mxu0 }
  0xf1   : > { %v2526_v31 = vadd.f32 %v2505_v15, %v643_v30  ;;  %v2098_v32 = vpop.f32.mrb[7].mxu0  ;;  %v712_v33 = vsel %vm705_vm2, %v694_v29, 0.0 }
  0xf2   : > { %713 = vadd.xlane.f32.xlu1 %v712_v33 }
  0xf3   : > { %v695_v34 = vmax.f32 %v2526_v31, 0.0 }
  0xf4   : > { %v648_v35 = vpop.f32.mrb[8].mxu0 }
  0xf5   : > { %v2533_v36 = vadd.f32 %v2505_v15, %v648_v35  ;;  %v2101_v37 = vpop.f32.mrb[9].mxu0  ;;  %v715_v38 = vsel %vm705_vm2, %v695_v34, 0.0 }
  0xf6   : > { %716 = vadd.xlane.f32.xlu1 %v715_v38 }
  0xf7   : > { %v696_v39 = vmax.f32 %v2533_v36, 0.0 }
  0xf8   : > { %v653_v40 = vpop.f32.mrb[10].mxu0 }
  0xf9   : > { %v2540_v41 = vadd.f32 %v2505_v15, %v653_v40  ;;  %v2104_v42 = vpop.f32.mrb[11].mxu0  ;;  %v718_v43 = vsel %vm705_vm2, %v696_v39, 0.0 }
  0xfa   : > { %719 = vadd.xlane.f32.xlu0 %v718_v43 }
  0xfb   : > { %v697_v44 = vmax.f32 %v2540_v41, 0.0 }
  0xfc   : > { %v658_v45 = vpop.f32.mrb[12].mxu0 }
  0xfd   : > { %v2547_v46 = vadd.f32 %v2505_v15, %v658_v45  ;;  %v2107_v47 = vpop.f32.mrb[13].mxu0  ;;  %v721_v48 = vsel %vm705_vm2, %v697_v44, 0.0 }
  0xfe   : > { %722 = vadd.xlane.f32.xlu1 %v721_v48 }
  0xff   : > { %v698_v49 = vmax.f32 %v2547_v46, 0.0 }
 0x100   : > { %v663_v50 = vpop.f32.mrb[14].mxu0 }
 0x101   : > { %v2554_v51 = vadd.f32 %v2505_v15, %v663_v50  ;;  %v2110_v52 = vpop.f32.mrb[15].mxu0  ;;  %v724_v53 = vsel %vm705_vm2, %v698_v49, 0.0 }
 0x102   : > { %725 = vadd.xlane.f32.xlu0 %v724_v53 }
 0x103   : > { %v699_v54 = vmax.f32 %v2554_v51, 0.0 }
 0x104   : > { %v668_v55 = vpop.f32.mrb[16].mxu0 }
 0x105   : > { %v2561_v56 = vadd.f32 %v2505_v15, %v668_v55  ;;  %v2113_v57 = vpop.f32.mrb[17].mxu0  ;;  %v727_v58 = vsel %vm705_vm2, %v699_v54, 0.0 }
 0x106   : > { %728 = vadd.xlane.f32.xlu1 %v727_v58 }
 0x107   : > { %v700_v59 = vmax.f32 %v2561_v56, 0.0  ;;  %v918_v56 = vld [vmem:[%s3393_s5 + $0x18] sm:$0xff] }
 0x108   : > { %v673_v60 = vpop.f32.mrb[18].mxu0 }
 0x109   : > { %v2568_v61 = vadd.f32 %v2505_v15, %v673_v60  ;;  %v2116_v62 = vpop.f32.mrb[19].mxu0  ;;  %v730_v63 = vsel %vm705_vm2, %v700_v59, 0.0 }
 0x10a   : > { %731 = vadd.xlane.f32.xlu0 %v730_v63 }
 0x10b   : > { %v701_v0 = vmax.f32 %v2568_v61, 0.0 }
 0x10c   : > { %v678_v2 = vpop.f32.mrb[20].mxu0 }
 0x10d   : > { %v2575_v3 = vadd.f32 %v2505_v15, %v678_v2  ;;  %v2119_v4 = vpop.f32.mrb[21].mxu0  ;;  %v733_v5 = vsel %vm705_vm2, %v701_v0, 0.0 }
 0x10e   : > { %734 = vadd.xlane.f32.xlu1 %v733_v5  ;;  %v916_v4 = vld [vmem:[%s3393_s5 + $0x8] sm:$0xff] }
 0x10f   : > { %v702_v6 = vmax.f32 %v2575_v3, 0.0 }
 0x110   : > { %v683_v7 = vpop.f32.mrb[22].mxu0 }
 0x111   : > { %v2582_v8 = vadd.f32 %v2505_v15, %v683_v7  ;;  %v2122_v9 = vpop.f32.mrb[23].mxu0  ;;  %v736_v10 = vsel %vm705_vm2, %v702_v6, 0.0  ;;  %v2343_v7 = vmov 0.0|0.0  }
 0x112   : > { %737 = vadd.xlane.f32.xlu0 %v736_v10  ;;  %2209 = vmatprep.subr.bf16.mxu1 %v2343_v7 }
 0x113   : > { %v703_v11 = vmax.f32 %v2582_v8, 0.0 }
 0x114   : > { %v688_v12 = vpop.f32.mrb[24].mxu0 }
 0x115   : > { %v2589_v13 = vadd.f32 %v2505_v15, %v688_v12  ;;  %v739_v14 = vsel %vm705_vm2, %v703_v11, 0.0  ;;  %v2125_v16 = vpop.f32.mrb[25].mxu0 }
 0x116   : > { %740 = vadd.xlane.f32.xlu1 %v739_v14  ;;  %v917_v14 = vld [vmem:[%s3393_s5 + $0x10] sm:$0xff] }
 0x117   : > { %v704_v18 = vmax.f32 %v2589_v13, 0.0 }
 0x119   : > { %v742_v20 = vsel %vm705_vm2, %v704_v18, 0.0 }
 0x11a   : > { %743 = vadd.xlane.f32.xlu0 %v742_v20 }
 0x177   : > { %v708_v22 = vpop.xlane.xlu0 %707 }
 0x178   : > { %v745_v23 = vmul.f32 0.03125, %v708_v22 }
 0x17a   : > { %v2600_v25 = vsub.f32 %v692_v19, %v745_v23 }
 0x17b   : > { %v711_v15 = vpop.xlane.xlu0 %710 }
 0x17c   : > { %v746_v27 = vmul.f32 0.03125, %v711_v15  ;;  %v771_v28 = vmul.f32 %v2600_v25, %v2600_v25 }
 0x17e   : > { %v2606_v30 = vsub.f32 %v693_v24, %v746_v27  ;;  %v784_v32 = vsel %vm705_vm2, %v771_v28, 0.0 }
 0x17f   : > { %v714_v33 = vpop.xlane.xlu1 %713  ;;  %785 = vadd.xlane.f32.xlu1 %v784_v32 }
 0x180   : > { %v747_v35 = vmul.f32 0.03125, %v714_v33  ;;  %v772_v37 = vmul.f32 %v2606_v30, %v2606_v30 }
 0x182   : > { %v2613_v17 = vsub.f32 %v694_v29, %v747_v35  ;;  %v787_v19 = vsel %vm705_vm2, %v772_v37, 0.0 }
 0x183   : > { %v717_v38 = vpop.xlane.xlu1 %716  ;;  %788 = vadd.xlane.f32.xlu0 %v787_v19 }
 0x184   : > { %v748_v40 = vmul.f32 0.03125, %v717_v38  ;;  %v773_v21 = vmul.f32 %v2613_v17, %v2613_v17 }
 0x186   : > { %v2620_v24 = vsub.f32 %v695_v34, %v748_v40  ;;  %v790_v42 = vsel %vm705_vm2, %v773_v21, 0.0 }
 0x187   : > { %v720_v43 = vpop.xlane.xlu0 %719  ;;  %791 = vadd.xlane.f32.xlu1 %v790_v42 }
 0x188   : > { %v749_v45 = vmul.f32 0.03125, %v720_v43  ;;  %v774_v26 = vmul.f32 %v2620_v24, %v2620_v24 }
 0x18a   : > { %v2627_v29 = vsub.f32 %v696_v39, %v749_v45  ;;  %v793_v47 = vsel %vm705_vm2, %v774_v26, 0.0 }
 0x18b   : > { %v723_v48 = vpop.xlane.xlu1 %722  ;;  %794 = vadd.xlane.f32.xlu0 %v793_v47 }
 0x18c   : > { %v750_v50 = vmul.f32 0.03125, %v723_v48  ;;  %v775_v31 = vmul.f32 %v2627_v29, %v2627_v29 }
 0x18e   : > { %v2634_v34 = vsub.f32 %v697_v44, %v750_v50  ;;  %v796_v52 = vsel %vm705_vm2, %v775_v31, 0.0 }
 0x18f   : > { %v726_v53 = vpop.xlane.xlu0 %725  ;;  %797 = vadd.xlane.f32.xlu1 %v796_v52 }
 0x190   : > { %v751_v55 = vmul.f32 0.03125, %v726_v53  ;;  %v776_v36 = vmul.f32 %v2634_v34, %v2634_v34  ;;  %v2704_v53 = vld [vmem:[%s3391_s3] ss:$0 sm:$0xff] }
 0x192   : > { %v2641_v39 = vsub.f32 %v698_v49, %v751_v55  ;;  %v799_v57 = vsel %vm705_vm2, %v776_v36, 0.0  ;;  %v915_v49 = vld [vmem:[%s3393_s5] sm:$0xff] }
 0x193   : > { %v729_v58 = vpop.xlane.xlu1 %728  ;;  %800 = vadd.xlane.f32.xlu0 %v799_v57  ;;  %v2210_v5 = vpack.c.bf16 %v916_v4, %v915_v49 }
 0x194   : > { %v752_v60 = vmul.f32 0.03125, %v729_v58  ;;  %v777_v41 = vmul.f32 %v2641_v39, %v2641_v39  ;;  %v2710_v58 = vld [vmem:[%s3392_s4] ss:$0 sm:$0xff] }
 0x195   : > { %2211 = vmatpush3.bf16.msra.mxu1 %v2210_v5 }
 0x196   : > { %v2648_v44 = vsub.f32 %v699_v54, %v752_v60  ;;  %v802_v62 = vsel %vm705_vm2, %v777_v41, 0.0  ;;  %2212 = vmatprep.subr.bf16.mxu1 %v2343_v7 }
 0x197   : > { %v732_v63 = vpop.xlane.xlu0 %731  ;;  %803 = vadd.xlane.f32.xlu1 %v802_v62 }
 0x198   : > { %v753_v2 = vmul.f32 0.03125, %v732_v63  ;;  %v778_v46 = vmul.f32 %v2648_v44, %v2648_v44 }
 0x19a   : > { %v2661_v51 = vsub.f32 %v700_v59, %v753_v2  ;;  %v805_v54 = vsel %vm705_vm2, %v778_v46, 0.0  ;;  %v2213_v59 = vpack.c.bf16 %v918_v56, %v917_v14 }
 0x19b   : > { %v735_v9 = vpop.xlane.xlu1 %734  ;;  %806 = vadd.xlane.f32.xlu0 %v805_v54 }
 0x19c   : > { %v754_v10 = vmul.f32 0.03125, %v735_v9  ;;  %v779_v12 = vmul.f32 %v2661_v51, %v2661_v51  ;;  %2214 = vmatpush3.bf16.msra.mxu1 %v2213_v59 }
 0x19e   : > { %v2674_v16 = vsub.f32 %v701_v0, %v754_v10  ;;  %v808_v20 = vsel %vm705_vm2, %v779_v12, 0.0 }
 0x19f   : > { %v738_v22 = vpop.xlane.xlu0 %737  ;;  %809 = vadd.xlane.f32.xlu1 %v808_v20 }
 0x1a0   : > { %v755_v23 = vmul.f32 0.03125, %v738_v22  ;;  %v780_v15 = vmul.f32 %v2674_v16, %v2674_v16 }
 0x1a2   : > { %v2681_v27 = vsub.f32 %v702_v6, %v755_v23  ;;  %v811_v28 = vsel %vm705_vm2, %v780_v15, 0.0 }
 0x1a3   : > { %v741_v32 = vpop.xlane.xlu1 %740  ;;  %812 = vadd.xlane.f32.xlu0 %v811_v28 }
 0x1a4   : > { %v756_v61 = vmul.f32 0.03125, %v741_v32  ;;  %v781_v0 = vmul.f32 %v2681_v27, %v2681_v27 }
 0x1a6   : > { %v2688_v33 = vsub.f32 %v703_v11, %v756_v61  ;;  %v814_v35 = vsel %vm705_vm2, %v781_v0, 0.0 }
 0x1a7   : > { %815 = vadd.xlane.f32.xlu1 %v814_v35  ;;  %v744_v37 = vpop.xlane.xlu0 %743 }
 0x1a8   : > { %v757_v19 = vmul.f32 0.03125, %v744_v37  ;;  %v782_v3 = vmul.f32 %v2688_v33, %v2688_v33 }
 0x1aa   : > { %v2695_v6 = vsub.f32 %v704_v18, %v757_v19  ;;  %v817_v38 = vsel %vm705_vm2, %v782_v3, 0.0 }
 0x1ab   : > { %818 = vadd.xlane.f32.xlu0 %v817_v38 }
 0x1ac   : > { %v783_v8 = vmul.f32 %v2695_v6, %v2695_v6 }
 0x1ae   : > { %v820_v11 = vsel %vm705_vm2, %v783_v8, 0.0 }
 0x1af   : > { %821 = vadd.xlane.f32.xlu1 %v820_v11 }
 0x20c   : > { %v786_v40 = vpop.xlane.xlu1 %785 }
 0x20d   : > { %v823_v21 = vmul.f32 0.03125, %v786_v40 }
 0x20f   : > { %v836_v42 = vadd.f32 1e-05, %v823_v21 }
 0x210   : > { %v789_v43 = vpop.xlane.xlu0 %788 }
 0x211   : > { %2255 = vrsqrt.f32 %v836_v42  ;;  %v824_v45 = vmul.f32 0.03125, %v789_v43 }
 0x213   : > { %v837_v26 = vadd.f32 1e-05, %v824_v45 }
 0x214   : > { %v792_v47 = vpop.xlane.xlu1 %791 }
 0x215   : > { %2257 = vrsqrt.f32 %v837_v26  ;;  %v825_v13 = vmul.f32 0.03125, %v792_v47 }
 0x217   : > { %v838_v18 = vadd.f32 1e-05, %v825_v13 }
 0x218   : > { %v795_v48 = vpop.xlane.xlu0 %794 }
 0x219   : > { %2259 = vrsqrt.f32 %v838_v18  ;;  %v826_v50 = vmul.f32 0.03125, %v795_v48 }
 0x21b   : > { %v2256_v31 = vpop.eup %2255  ;;  %v839_v52 = vadd.f32 1e-05, %v826_v50 }
 0x21c   : > { %v798_v55 = vpop.xlane.xlu1 %797  ;;  %v862_v36 = vmul.f32 %v2256_v31, %v2600_v25 }
 0x21d   : > { %2261 = vrsqrt.f32 %v839_v52  ;;  %v827_v57 = vmul.f32 0.03125, %v798_v55 }
 0x21e   : > { %v882_v60 = vmul.f32 %v2704_v53, %v862_v36 }
 0x21f   : > { %v2258_v41 = vpop.eup %2257  ;;  %v840_v62 = vadd.f32 1e-05, %v827_v57 }
 0x220   : > { %v801_v63 = vpop.xlane.xlu0 %800  ;;  %v902_v2 = vadd.f32 %v2710_v58, %v882_v60  ;;  %v863_v46 = vmul.f32 %v2258_v41, %v2606_v30 }
 0x221   : > { %2263 = vrsqrt.f32 %v840_v62  ;;  %v828_v49 = vmul.f32 0.03125, %v801_v63 }
 0x222   : > { %2135 = vmatmul.mubr.msk.f32.vlgmr.msra.gmra.mrb[0].mxu1 %vm705_vm2, %v902_v2  ;;  %v883_v25 = vmul.f32 %v2704_v53, %v863_v46 }
 0x223   : > { %v2260_v4 = vpop.eup %2259  ;;  %v841_v5 = vadd.f32 1e-05, %v828_v49  ;;  %2137 = vmatprep.mubr.msk.f32.mxu1 %vm2342_vm0, %v2341_v1 }
 0x224   : > { %v804_v54 = vpop.xlane.xlu1 %803  ;;  %v903_v7 = vadd.f32 %v2710_v58, %v883_v25  ;;  %v864_v9 = vmul.f32 %v2260_v4, %v2613_v17 }
 0x225   : > { %2265 = vrsqrt.f32 %v841_v5  ;;  %v829_v10 = vmul.f32 0.03125, %v804_v54 }
 0x226   : > { %2138 = vmatmul.mubr.msk.f32.gmra.mrb[2].mxu1 %vm705_vm2, %v903_v7  ;;  %v884_v30 = vmul.f32 %v2704_v53, %v864_v9 }
 0x227   : > { %v2262_v12 = vpop.eup %2261  ;;  %v842_v14 = vadd.f32 1e-05, %v829_v10  ;;  %2140 = vmatprep.mubr.msk.f32.mxu1 %vm2342_vm0, %v2341_v1 }
 0x228   : > { %v807_v56 = vpop.xlane.xlu0 %806  ;;  %v904_v59 = vadd.f32 %v2710_v58, %v884_v30  ;;  %v865_v20 = vmul.f32 %v2262_v12, %v2620_v24  ;;  %v2790_v12 = vld [vmem:[%s3394_s6] ss:$0 sm:$0xff] }
 0x229   : > { %2267 = vrsqrt.f32 %v842_v14  ;;  %v830_v22 = vmul.f32 0.03125, %v807_v56 }
 0x22a   : > { %2141 = vmatmul.mubr.msk.f32.gmra.mrb[4].mxu1 %vm705_vm2, %v904_v59  ;;  %v885_v17 = vmul.f32 %v2704_v53, %v865_v20 }
 0x22b   : > { %v2264_v23 = vpop.eup %2263  ;;  %v843_v15 = vadd.f32 1e-05, %v830_v22  ;;  %2143 = vmatprep.mubr.msk.f32.mxu1 %vm2342_vm0, %v2341_v1 }
 0x22c   : > { %v810_v28 = vpop.xlane.xlu1 %809  ;;  %v905_v32 = vadd.f32 %v2710_v58, %v885_v17  ;;  %v866_v61 = vmul.f32 %v2264_v23, %v2627_v29 }
 0x22d   : > { %2269 = vrsqrt.f32 %v843_v15  ;;  %v831_v0 = vmul.f32 0.03125, %v810_v28 }
 0x22e   : > { %2144 = vmatmul.mubr.msk.f32.gmra.mrb[6].mxu1 %vm705_vm2, %v905_v32  ;;  %v886_v24 = vmul.f32 %v2704_v53, %v866_v61 }
 0x22f   : > { %v2266_v35 = vpop.eup %2265  ;;  %v844_v37 = vadd.f32 1e-05, %v831_v0  ;;  %2146 = vmatprep.mubr.msk.f32.mxu1 %vm2342_vm0, %v2341_v1 }
 0x230   : > { %v813_v19 = vpop.xlane.xlu0 %812  ;;  %v906_v3 = vadd.f32 %v2710_v58, %v886_v24  ;;  %v867_v38 = vmul.f32 %v2266_v35, %v2634_v34 }
 0x231   : > { %2271 = vrsqrt.f32 %v844_v37  ;;  %v832_v8 = vmul.f32 0.03125, %v813_v19 }
 0x232   : > { %2147 = vmatmul.mubr.msk.f32.gmra.mrb[8].mxu1 %vm705_vm2, %v906_v3  ;;  %v887_v29 = vmul.f32 %v2704_v53, %v867_v38 }
 0x233   : > { %v2268_v11 = vpop.eup %2267  ;;  %v845_v40 = vadd.f32 1e-05, %v832_v8  ;;  %2149 = vmatprep.mubr.msk.f32.mxu1 %vm2342_vm0, %v2341_v1 }
 0x234   : > { %v816_v21 = vpop.xlane.xlu1 %815  ;;  %v907_v42 = vadd.f32 %v2710_v58, %v887_v29  ;;  %v868_v43 = vmul.f32 %v2268_v11, %v2641_v39 }
 0x235   : > { %2273 = vrsqrt.f32 %v845_v40  ;;  %v833_v45 = vmul.f32 0.03125, %v816_v21 }
 0x236   : > { %2150 = vmatmul.mubr.msk.f32.gmra.mrb[10].mxu1 %vm705_vm2, %v907_v42  ;;  %v888_v34 = vmul.f32 %v2704_v53, %v868_v43 }
 0x237   : > { %v2270_v26 = vpop.eup %2269  ;;  %v846_v47 = vadd.f32 1e-05, %v833_v45  ;;  %2152 = vmatprep.mubr.msk.f32.mxu1 %vm2342_vm0, %v2341_v1 }
 0x238   : > { %v819_v13 = vpop.xlane.xlu0 %818  ;;  %v908_v18 = vadd.f32 %v2710_v58, %v888_v34  ;;  %v869_v48 = vmul.f32 %v2270_v26, %v2648_v44 }
 0x239   : > { %2275 = vrsqrt.f32 %v846_v47  ;;  %v834_v50 = vmul.f32 0.03125, %v819_v13 }
 0x23a   : > { %2153 = vmatmul.mubr.msk.f32.gmra.mrb[12].mxu1 %vm705_vm2, %v908_v18  ;;  %v889_v39 = vmul.f32 %v2704_v53, %v869_v48 }
 0x23b   : > { %v2272_v31 = vpop.eup %2271  ;;  %v847_v52 = vadd.f32 1e-05, %v834_v50  ;;  %2155 = vmatprep.mubr.msk.f32.mxu1 %vm2342_vm0, %v2341_v1 }
 0x23c   : > { %v822_v55 = vpop.xlane.xlu1 %821  ;;  %v909_v36 = vadd.f32 %v2710_v58, %v889_v39  ;;  %v870_v57 = vmul.f32 %v2272_v31, %v2661_v51 }
 0x23d   : > { %2277 = vrsqrt.f32 %v847_v52  ;;  %v835_v60 = vmul.f32 0.03125, %v822_v55 }
 0x23e   : > { %2156 = vmatmul.mubr.msk.f32.gmra.mrb[14].mxu1 %vm705_vm2, %v909_v36  ;;  %v890_v44 = vmul.f32 %v2704_v53, %v870_v57 }
 0x23f   : > { %v2274_v41 = vpop.eup %2273  ;;  %v848_v62 = vadd.f32 1e-05, %v835_v60  ;;  %2158 = vmatprep.mubr.msk.f32.mxu1 %vm2342_vm0, %v2341_v1 }
 0x240   : > { %v910_v63 = vadd.f32 %v2710_v58, %v890_v44  ;;  %v871_v2 = vmul.f32 %v2274_v41, %v2674_v16 }
 0x241   : > { %2279 = vrsqrt.f32 %v848_v62 }
 0x242   : > { %2159 = vmatmul.mubr.msk.f32.gmra.mrb[16].mxu1 %vm705_vm2, %v910_v63  ;;  %v891_v51 = vmul.f32 %v2704_v53, %v871_v2 }
 0x243   : > { %v2276_v46 = vpop.eup %2275  ;;  %2161 = vmatprep.mubr.msk.f32.mxu1 %vm2342_vm0, %v2341_v1 }
 0x244   : > { %v911_v49 = vadd.f32 %v2710_v58, %v891_v51  ;;  %v872_v25 = vmul.f32 %v2276_v46, %v2681_v27 }
 0x246   : > { %2162 = vmatmul.mubr.msk.f32.gmra.mrb[18].mxu1 %vm705_vm2, %v911_v49  ;;  %v892_v4 = vmul.f32 %v2704_v53, %v872_v25 }
 0x247   : > { %v2278_v5 = vpop.eup %2277  ;;  %2164 = vmatprep.mubr.msk.f32.mxu1 %vm2342_vm0, %v2341_v1 }
 0x248   : > { %v912_v16 = vadd.f32 %v2710_v58, %v892_v4  ;;  %v873_v54 = vmul.f32 %v2278_v5, %v2688_v33 }
 0x24a   : > { %2165 = vmatmul.mubr.msk.f32.gmra.mrb[20].mxu1 %vm705_vm2, %v912_v16  ;;  %v893_v7 = vmul.f32 %v2704_v53, %v873_v54 }
 0x24b   : > { %v2280_v9 = vpop.eup %2279  ;;  %2167 = vmatprep.mubr.msk.f32.mxu1 %vm2342_vm0, %v2341_v1 }
 0x24c   : > { %v913_v27 = vadd.f32 %v2710_v58, %v893_v7  ;;  %v874_v10 = vmul.f32 %v2280_v9, %v2695_v6 }
 0x24e   : > { %2168 = vmatmul.mubr.msk.f32.gmra.mrb[22].mxu1 %vm705_vm2, %v913_v27  ;;  %v894_v30 = vmul.f32 %v2704_v53, %v874_v10 }
 0x24f   : > { %2170 = vmatprep.mubr.msk.f32.mxu1 %vm2342_vm0, %v2341_v1 }
 0x250   : > { %v914_v33 = vadd.f32 %v2710_v58, %v894_v30 }
 0x252   : > { %2171 = vmatmul.mubr.msk.f32.gmra.mrb[24].mxu1 %vm705_vm2, %v914_v33 }
 0x2f5   : > { %v1031_v14 = vpop.f32.mrb[0].mxu1 }
 0x2f6   : > { %v2793_v56 = vadd.f32 %v2790_v12, %v1031_v14  ;;  %v2136_v6 = vpop.f32.mrb[1].mxu1 }
 0x2f8   : > { %v1095_v53 = vmax.f32 %v2793_v56, 0.0 }
 0x2f9   : > { %v1036_v59 = vpop.f32.mrb[2].mxu1 }
 0x2fa   : > { %v2797_v20 = vadd.f32 %v2790_v12, %v1036_v59  ;;  %v2139_v58 = vpop.f32.mrb[3].mxu1  ;;  %v1109_v22 = vsel %vm1108_vm3, %v1095_v53, 0.0 }
 0x2fb   : > { %1110 = vadd.xlane.f32.xlu0 %v1109_v22  ;;  %v2227_v58 = vld [vmem:[%s3397_s9] sm:$0xff]  }
 0x2fc   : > { %v1096_v17 = vmax.f32 %v2797_v20, 0.0  ;;  %2174 = vmatpush3.bf16.msra.mxu0 %v2227_v58  ;;  %v2230_v58 = vld [vmem:[%s3397_s9 + $0x18] sm:$0xff]  }
 0x2fd   : > { %v1041_v23 = vpop.f32.mrb[4].mxu1  ;;  %2175 = vmatprep.subr.bf16.mxu0 %v2341_v1 }
 0x2fe   : > { %v2804_v15 = vadd.f32 %v2790_v12, %v1041_v23  ;;  %v2142_v28 = vpop.f32.mrb[5].mxu1  ;;  %v1112_v32 = vsel %vm1108_vm3, %v1096_v17, 0.0 }
 0x2ff   : > { %1113 = vadd.xlane.f32.xlu1 %v1112_v32 }
 0x300   : > { %v1097_v61 = vmax.f32 %v2804_v15, 0.0 }
 0x301   : > { %v1046_v0 = vpop.f32.mrb[6].mxu1 }
 0x302   : > { %v2811_v24 = vadd.f32 %v2790_v12, %v1046_v0  ;;  %v2145_v35 = vpop.f32.mrb[7].mxu1  ;;  %v1115_v37 = vsel %vm1108_vm3, %v1097_v61, 0.0 }
 0x303   : > { %1116 = vadd.xlane.f32.xlu0 %v1115_v37 }
 0x304   : > { %v1098_v19 = vmax.f32 %v2811_v24, 0.0 }
 0x305   : > { %v1051_v3 = vpop.f32.mrb[8].mxu1 }
 0x306   : > { %v2818_v38 = vadd.f32 %v2790_v12, %v1051_v3  ;;  %v2148_v8 = vpop.f32.mrb[9].mxu1  ;;  %v1118_v29 = vsel %vm1108_vm3, %v1098_v19, 0.0 }
 0x307   : > { %1119 = vadd.xlane.f32.xlu1 %v1118_v29 }
 0x308   : > { %v1099_v11 = vmax.f32 %v2818_v38, 0.0 }
 0x309   : > { %v1056_v40 = vpop.f32.mrb[10].mxu1 }
 0x30a   : > { %v2825_v21 = vadd.f32 %v2790_v12, %v1056_v40  ;;  %v2151_v42 = vpop.f32.mrb[11].mxu1  ;;  %v1121_v43 = vsel %vm1108_vm3, %v1099_v11, 0.0 }
 0x30b   : > { %1122 = vadd.xlane.f32.xlu0 %v1121_v43 }
 0x30c   : > { %v1100_v45 = vmax.f32 %v2825_v21, 0.0 }
 0x30d   : > { %v1061_v34 = vpop.f32.mrb[12].mxu1 }
 0x30e   : > { %v2832_v26 = vadd.f32 %v2790_v12, %v1061_v34  ;;  %v2154_v47 = vpop.f32.mrb[13].mxu1  ;;  %v1124_v13 = vsel %vm1108_vm3, %v1100_v45, 0.0 }
 0x30f   : > { %1125 = vadd.xlane.f32.xlu1 %v1124_v13 }
 0x310   : > { %v1101_v18 = vmax.f32 %v2832_v26, 0.0 }
 0x311   : > { %v1066_v48 = vpop.f32.mrb[14].mxu1 }
 0x312   : > { %v2839_v50 = vadd.f32 %v2790_v12, %v1066_v48  ;;  %v2157_v39 = vpop.f32.mrb[15].mxu1  ;;  %v1127_v31 = vsel %vm1108_vm3, %v1101_v18, 0.0 }
 0x313   : > { %1128 = vadd.xlane.f32.xlu0 %v1127_v31 }
 0x314   : > { %v1102_v52 = vmax.f32 %v2839_v50, 0.0 }
 0x315   : > { %v1071_v55 = vpop.f32.mrb[16].mxu1 }
 0x316   : > { %v2846_v36 = vadd.f32 %v2790_v12, %v1071_v55  ;;  %v2160_v57 = vpop.f32.mrb[17].mxu1  ;;  %v1130_v60 = vsel %vm1108_vm3, %v1102_v52, 0.0 }
 0x317   : > { %1131 = vadd.xlane.f32.xlu1 %v1130_v60 }
 0x318   : > { %v1103_v44 = vmax.f32 %v2846_v36, 0.0  ;;  %v2229_v36 = vld [vmem:[%s3397_s9 + $0x10] sm:$0xff]  }
 0x319   : > { %v1076_v41 = vpop.f32.mrb[18].mxu1 }
 0x31a   : > { %v2853_v62 = vadd.f32 %v2790_v12, %v1076_v41  ;;  %v2163_v63 = vpop.f32.mrb[19].mxu1  ;;  %v1133_v2 = vsel %vm1108_vm3, %v1103_v44, 0.0 }
 0x31b   : > { %1134 = vadd.xlane.f32.xlu0 %v1133_v2 }
 0x31c   : > { %v1104_v51 = vmax.f32 %v2853_v62, 0.0 }
 0x31d   : > { %v1081_v46 = vpop.f32.mrb[20].mxu1 }
 0x31e   : > { %v2860_v49 = vadd.f32 %v2790_v12, %v1081_v46  ;;  %v2166_v25 = vpop.f32.mrb[21].mxu1  ;;  %v1136_v4 = vsel %vm1108_vm3, %v1104_v51, 0.0 }
 0x31f   : > { %1137 = vadd.xlane.f32.xlu1 %v1136_v4 }
 0x320   : > { %v1105_v5 = vmax.f32 %v2860_v49, 0.0 }
 0x321   : > { %v1086_v16 = vpop.f32.mrb[22].mxu1 }
 0x322   : > { %v2867_v54 = vadd.f32 %v2790_v12, %v1086_v16  ;;  %v2169_v7 = vpop.f32.mrb[23].mxu1  ;;  %v1139_v9 = vsel %vm1108_vm3, %v1105_v5, 0.0 }
 0x323   : > { %1140 = vadd.xlane.f32.xlu0 %v1139_v9 }
 0x324   : > { %v1106_v27 = vmax.f32 %v2867_v54, 0.0 }
 0x325   : > { %v1091_v10 = vpop.f32.mrb[24].mxu1 }
 0x326   : > { %v2874_v30 = vadd.f32 %v2790_v12, %v1091_v10  ;;  %v2172_v33 = vpop.f32.mrb[25].mxu1  ;;  %v1142_v14 = vsel %vm1108_vm3, %v1106_v27, 0.0  ;;  %v2228_v12 = vld [vmem:[%s3397_s9 + $0x8] sm:$0xff]  }
 0x327   : > { %1143 = vadd.xlane.f32.xlu1 %v1142_v14  ;;  %2176 = vmatpush3.bf16.msra.mxu0 %v2228_v12 }
 0x328   : > { %v1107_v6 = vmax.f32 %v2874_v30, 0.0  ;;  %2177 = vmatprep.subr.bf16.mxu0 %v2341_v1 }
 0x32a   : > { %v1145_v59 = vsel %vm1108_vm3, %v1107_v6, 0.0 }
 0x32b   : > { %1146 = vadd.xlane.f32.xlu0 %v1145_v59  ;;  %2178 = vmatpush3.bf16.msra.mxu0 %v2229_v36 }
 0x32c   : > { %2179 = vmatprep.subr.bf16.mxu0 %v2341_v1 }
 0x32f   : > { %2180 = vmatpush3.bf16.msra.mxu0 %v2230_v58 }
 0x388   : > { %v1111_v22 = vpop.xlane.xlu0 %1110 }
 0x389   : > { %v1148_v23 = vmul.f32 0.015625, %v1111_v22 }
 0x38b   : > { %v2893_v28 = vsub.f32 %v1095_v53, %v1148_v23 }
 0x38c   : > { %v1114_v32 = vpop.xlane.xlu1 %1113 }
 0x38d   : > { %v1149_v0 = vmul.f32 0.015625, %v1114_v32  ;;  %v1174_v35 = vmul.f32 %v2893_v28, %v2893_v28 }
 0x38f   : > { %v2899_v37 = vsub.f32 %v1096_v17, %v1149_v0  ;;  %v1187_v3 = vsel %vm1108_vm3, %v1174_v35, 0.0 }
 0x390   : > { %1188 = vadd.xlane.f32.xlu1 %v1187_v3  ;;  %v1117_v8 = vpop.xlane.xlu0 %1116 }
 0x391   : > { %v1150_v29 = vmul.f32 0.015625, %v1117_v8  ;;  %v1175_v40 = vmul.f32 %v2899_v37, %v2899_v37 }
 0x393   : > { %v2906_v56 = vsub.f32 %v1097_v61, %v1150_v29  ;;  %v1190_v53 = vsel %vm1108_vm3, %v1175_v40, 0.0 }
 0x394   : > { %v1120_v42 = vpop.xlane.xlu1 %1119  ;;  %1191 = vadd.xlane.f32.xlu0 %v1190_v53 }
 0x395   : > { %v1151_v43 = vmul.f32 0.015625, %v1120_v42  ;;  %v1176_v20 = vmul.f32 %v2906_v56, %v2906_v56 }
 0x397   : > { %v2913_v17 = vsub.f32 %v1098_v19, %v1151_v43  ;;  %v1193_v34 = vsel %vm1108_vm3, %v1176_v20, 0.0 }
 0x398   : > { %1194 = vadd.xlane.f32.xlu1 %v1193_v34  ;;  %v1123_v47 = vpop.xlane.xlu0 %1122 }
 0x399   : > { %v1152_v13 = vmul.f32 0.015625, %v1123_v47  ;;  %v1177_v15 = vmul.f32 %v2913_v17, %v2913_v17 }
 0x39b   : > { %v2920_v61 = vsub.f32 %v1099_v11, %v1152_v13  ;;  %v1196_v48 = vsel %vm1108_vm3, %v1177_v15, 0.0 }
 0x39c   : > { %v1126_v39 = vpop.xlane.xlu1 %1125  ;;  %1197 = vadd.xlane.f32.xlu0 %v1196_v48 }
 0x39d   : > { %v1153_v31 = vmul.f32 0.015625, %v1126_v39  ;;  %v1178_v24 = vmul.f32 %v2920_v61, %v2920_v61 }
 0x39f   : > { %v2927_v19 = vsub.f32 %v1100_v45, %v1153_v31  ;;  %v1199_v55 = vsel %vm1108_vm3, %v1178_v24, 0.0  ;;  %v2993_v31 = vld [vmem:[%s3395_s7] ss:$0 sm:$0xff] }
 0x3a0   : > { %1200 = vadd.xlane.f32.xlu1 %v1199_v55  ;;  %v1129_v57 = vpop.xlane.xlu0 %1128 }
 0x3a1   : > { %v1154_v60 = vmul.f32 0.015625, %v1129_v57  ;;  %v1179_v38 = vmul.f32 %v2927_v19, %v2927_v19 }
 0x3a3   : > { %v2934_v11 = vsub.f32 %v1101_v18, %v1154_v60  ;;  %v1202_v41 = vsel %vm1108_vm3, %v1179_v38, 0.0 }
 0x3a4   : > { %v1132_v63 = vpop.xlane.xlu1 %1131  ;;  %1203 = vadd.xlane.f32.xlu0 %v1202_v41 }
 0x3a5   : > { %v1155_v2 = vmul.f32 0.015625, %v1132_v63  ;;  %v1180_v21 = vmul.f32 %v2934_v11, %v2934_v11  ;;  %v3000_v63 = vld [vmem:[%s3396_s8] ss:$0 sm:$0xff] }
 0x3a7   : > { %v2941_v45 = vsub.f32 %v1102_v52, %v1155_v2  ;;  %v1205_v46 = vsel %vm1108_vm3, %v1180_v21, 0.0 }
 0x3a8   : > { %1206 = vadd.xlane.f32.xlu1 %v1205_v46  ;;  %v1135_v25 = vpop.xlane.xlu0 %1134 }
 0x3a9   : > { %v1156_v4 = vmul.f32 0.015625, %v1135_v25  ;;  %v1181_v26 = vmul.f32 %v2941_v45, %v2941_v45 }
 0x3ab   : > { %v2948_v18 = vsub.f32 %v1103_v44, %v1156_v4  ;;  %v1208_v16 = vsel %vm1108_vm3, %v1181_v26, 0.0 }
 0x3ac   : > { %v1138_v7 = vpop.xlane.xlu1 %1137  ;;  %1209 = vadd.xlane.f32.xlu0 %v1208_v16 }
 0x3ad   : > { %v1157_v9 = vmul.f32 0.015625, %v1138_v7  ;;  %v1182_v50 = vmul.f32 %v2948_v18, %v2948_v18 }
 0x3af   : > { %v2955_v52 = vsub.f32 %v1104_v51, %v1157_v9  ;;  %v1211_v10 = vsel %vm1108_vm3, %v1182_v50, 0.0 }
 0x3b0   : > { %1212 = vadd.xlane.f32.xlu1 %v1211_v10  ;;  %v1141_v33 = vpop.xlane.xlu0 %1140 }
 0x3b1   : > { %v1158_v44 = vmul.f32 0.015625, %v1141_v33  ;;  %v1183_v14 = vmul.f32 %v2955_v52, %v2955_v52 }
 0x3b3   : > { %v2965_v59 = vsub.f32 %v1105_v5, %v1158_v44  ;;  %v1214_v62 = vsel %vm1108_vm3, %v1183_v14, 0.0 }
 0x3b4   : > { %v1144_v51 = vpop.xlane.xlu1 %1143  ;;  %1215 = vadd.xlane.f32.xlu0 %v1214_v62 }
 0x3b5   : > { %v1159_v12 = vmul.f32 0.015625, %v1144_v51  ;;  %v1184_v22 = vmul.f32 %v2965_v59, %v2965_v59 }
 0x3b7   : > { %v2976_v49 = vsub.f32 %v1106_v27, %v1159_v12  ;;  %v1217_v5 = vsel %vm1108_vm3, %v1184_v22, 0.0 }
 0x3b8   : > { %1218 = vadd.xlane.f32.xlu1 %v1217_v5  ;;  %v1147_v23 = vpop.xlane.xlu0 %1146 }
 0x3b9   : > { %v1160_v32 = vmul.f32 0.015625, %v1147_v23  ;;  %v1185_v0 = vmul.f32 %v2976_v49, %v2976_v49 }
 0x3bb   : > { %v2983_v35 = vsub.f32 %v1107_v6, %v1160_v32  ;;  %v1220_v3 = vsel %vm1108_vm3, %v1185_v0, 0.0 }
 0x3bc   : > { %1221 = vadd.xlane.f32.xlu0 %v1220_v3 }
 0x3bd   : > { %v1186_v54 = vmul.f32 %v2983_v35, %v2983_v35 }
 0x3bf   : > { %v1223_v27 = vsel %vm1108_vm3, %v1186_v54, 0.0 }
 0x3c0   : > { %1224 = vadd.xlane.f32.xlu1 %v1223_v27 }
 0x41d   : > { %v1189_v8 = vpop.xlane.xlu1 %1188 }
 0x41e   : > { %v1226_v29 = vmul.f32 0.015625, %v1189_v8 }
 0x420   : > { %v1239_v40 = vadd.f32 1e-05, %v1226_v29 }
 0x421   : > { %v1192_v53 = vpop.xlane.xlu0 %1191 }
 0x422   : > { %2281 = vrsqrt.f32 %v1239_v40  ;;  %v1227_v42 = vmul.f32 0.015625, %v1192_v53 }
 0x424   : > { %v1240_v43 = vadd.f32 1e-05, %v1227_v42 }
 0x425   : > { %v1195_v20 = vpop.xlane.xlu1 %1194 }
 0x426   : > { %2283 = vrsqrt.f32 %v1240_v43  ;;  %v1228_v30 = vmul.f32 0.015625, %v1195_v20 }
 0x428   : > { %v1241_v6 = vadd.f32 1e-05, %v1228_v30 }
 0x429   : > { %v1198_v34 = vpop.xlane.xlu0 %1197 }
 0x42a   : > { %2285 = vrsqrt.f32 %v1241_v6  ;;  %v1229_v47 = vmul.f32 0.015625, %v1198_v34 }
 0x42c   : > { %v2282_v13 = vpop.eup %2281  ;;  %v1242_v15 = vadd.f32 1e-05, %v1229_v47 }
 0x42d   : > { %v1265_v48 = vmul.f32 %v2282_v13, %v2893_v28  ;;  %v1201_v39 = vpop.xlane.xlu1 %1200 }
 0x42e   : > { %2287 = vrsqrt.f32 %v1242_v15  ;;  %v1230_v24 = vmul.f32 0.015625, %v1201_v39 }
 0x42f   : > { %v1285_v60 = vmul.f32 %v2993_v31, %v1265_v48 }
 0x430   : > { %v2284_v55 = vpop.eup %2283  ;;  %v1243_v57 = vadd.f32 1e-05, %v1230_v24 }
 0x431   : > { %v1266_v38 = vmul.f32 %v2284_v55, %v2899_v37  ;;  %v1204_v41 = vpop.xlane.xlu0 %1203  ;;  %v1305_v25 = vadd.f32 %v3000_v63, %v1285_v60 }
 0x432   : > { %2289 = vrsqrt.f32 %v1243_v57  ;;  %v1231_v28 = vmul.f32 0.015625, %v1204_v41 }
 0x433   : > { %v1286_v2 = vmul.f32 %v2993_v31, %v1266_v38 }
 0x434   : > { %v2286_v21 = vpop.eup %2285  ;;  %v1244_v46 = vadd.f32 1e-05, %v1231_v28 }
 0x435   : > { %v1306_v4 = vadd.f32 %v3000_v63, %v1286_v2  ;;  %v1267_v26 = vmul.f32 %v2286_v21, %v2906_v56  ;;  %v1207_v16 = vpop.xlane.xlu1 %1206 }
 0x436   : > { %2291 = vrsqrt.f32 %v1244_v46  ;;  %v1232_v37 = vmul.f32 0.015625, %v1207_v16 }
 0x437   : > { %v1318_v7 = vpack.c.bf16 %v1306_v4, %v1305_v25  ;;  %v1287_v36 = vmul.f32 %v2993_v31, %v1267_v26 }
 0x438   : > { %v2288_v9 = vpop.eup %2287  ;;  %v1245_v50 = vadd.f32 1e-05, %v1232_v37 }
 0x439   : > { %v1268_v10 = vmul.f32 %v2288_v9, %v2913_v17  ;;  %2182 = vmatmul.mubr.msk.bf16.vlgmr.msra.gmra.mrb[28].mxu0 %vm1108_vm3, %v1318_v7  ;;  %v1210_v33 = vpop.xlane.xlu0 %1209  ;;  %v1307_v12 = vadd.f32 %v3000_v63, %v1287_v36 }
 0x43a   : > { %2293 = vrsqrt.f32 %v1245_v50  ;;  %v1233_v44 = vmul.f32 0.015625, %v1210_v33  ;;  %2185 = vmatprep.mubr.msk.bf16.mxu0 %vm2342_vm0, %v2341_v1 }
 0x43b   : > { %v1288_v56 = vmul.f32 %v2993_v31, %v1268_v10 }
 0x43c   : > { %v2290_v14 = vpop.eup %2289  ;;  %v1246_v62 = vadd.f32 1e-05, %v1233_v44 }
 0x43d   : > { %v1269_v51 = vmul.f32 %v2290_v14, %v2920_v61  ;;  %v1213_v58 = vpop.xlane.xlu1 %1212  ;;  %v1308_v17 = vadd.f32 %v3000_v63, %v1288_v56  ;;  %v2010_v14 = vld [vmem:[%s3398_s10] ss:$0 sm:$0xff] }
 0x43e   : > { %2295 = vrsqrt.f32 %v1246_v62  ;;  %v1234_v22 = vmul.f32 0.015625, %v1213_v58 }
 0x43f   : > { %v1319_v5 = vpack.c.bf16 %v1308_v17, %v1307_v12  ;;  %v1289_v54 = vmul.f32 %v2993_v31, %v1269_v51 }
 0x440   : > { %v2292_v23 = vpop.eup %2291  ;;  %v1247_v32 = vadd.f32 1e-05, %v1234_v22 }
 0x441   : > { %v1270_v0 = vmul.f32 %v2292_v23, %v2927_v19  ;;  %2186 = vmatmul.mubr.msk.bf16.gmra.mrb[32].mxu0 %vm1108_vm3, %v1319_v5  ;;  %v1216_v3 = vpop.xlane.xlu0 %1215  ;;  %v1309_v42 = vadd.f32 %v3000_v63, %v1289_v54 }
 0x442   : > { %2297 = vrsqrt.f32 %v1247_v32  ;;  %v1235_v27 = vmul.f32 0.015625, %v1216_v3  ;;  %2189 = vmatprep.mubr.msk.bf16.mxu0 %vm2342_vm0, %v2341_v1 }
 0x443   : > { %v1290_v61 = vmul.f32 %v2993_v31, %v1270_v0 }
 0x444   : > { %v2294_v8 = vpop.eup %2293  ;;  %v1248_v29 = vadd.f32 1e-05, %v1235_v27 }
 0x445   : > { %v1271_v40 = vmul.f32 %v2294_v8, %v2934_v11  ;;  %v1219_v53 = vpop.xlane.xlu1 %1218  ;;  %v1310_v19 = vadd.f32 %v3000_v63, %v1290_v61 }
 0x446   : > { %2299 = vrsqrt.f32 %v1248_v29  ;;  %v1236_v43 = vmul.f32 0.015625, %v1219_v53 }
 0x447   : > { %v1320_v20 = vpack.c.bf16 %v1310_v19, %v1309_v42  ;;  %v1291_v13 = vmul.f32 %v2993_v31, %v1271_v40 }
 0x448   : > { %v2296_v30 = vpop.eup %2295  ;;  %v1249_v6 = vadd.f32 1e-05, %v1236_v43 }
 0x449   : > { %v1272_v34 = vmul.f32 %v2296_v30, %v2941_v45  ;;  %2190 = vmatmul.mubr.msk.bf16.gmra.mrb[36].mxu0 %vm1108_vm3, %v1320_v20  ;;  %v1222_v47 = vpop.xlane.xlu0 %1221  ;;  %v1311_v57 = vadd.f32 %v3000_v63, %v1291_v13 }
 0x44a   : > { %2301 = vrsqrt.f32 %v1249_v6  ;;  %v1237_v15 = vmul.f32 0.015625, %v1222_v47  ;;  %2193 = vmatprep.mubr.msk.bf16.mxu0 %vm2342_vm0, %v2341_v1 }
 0x44b   : > { %v1292_v11 = vmul.f32 %v2993_v31, %v1272_v34 }
 0x44c   : > { %v2298_v48 = vpop.eup %2297  ;;  %v1250_v39 = vadd.f32 1e-05, %v1237_v15 }
 0x44d   : > { %v1273_v24 = vmul.f32 %v2298_v48, %v2948_v18  ;;  %v1225_v55 = vpop.xlane.xlu1 %1224  ;;  %v1312_v45 = vadd.f32 %v3000_v63, %v1292_v11 }
 0x44e   : > { %2303 = vrsqrt.f32 %v1250_v39  ;;  %v1238_v60 = vmul.f32 0.015625, %v1225_v55 }
 0x44f   : > { %v1321_v38 = vpack.c.bf16 %v1312_v45, %v1311_v57  ;;  %v1293_v21 = vmul.f32 %v2993_v31, %v1273_v24 }
 0x450   : > { %v2300_v41 = vpop.eup %2299  ;;  %v1251_v28 = vadd.f32 1e-05, %v1238_v60 }
 0x451   : > { %v1274_v2 = vmul.f32 %v2300_v41, %v2955_v52  ;;  %2194 = vmatmul.mubr.msk.bf16.gmra.mrb[40].mxu0 %vm1108_vm3, %v1321_v38  ;;  %v1313_v4 = vadd.f32 %v3000_v63, %v1293_v21 }
 0x452   : > { %2305 = vrsqrt.f32 %v1251_v28  ;;  %2197 = vmatprep.mubr.msk.bf16.mxu0 %vm2342_vm0, %v2341_v1 }
 0x453   : > { %v1294_v18 = vmul.f32 %v2993_v31, %v1274_v2 }
 0x454   : > { %v2302_v46 = vpop.eup %2301 }
 0x455   : > { %v1275_v25 = vmul.f32 %v2302_v46, %v2965_v59  ;;  %v1314_v26 = vadd.f32 %v3000_v63, %v1294_v18 }
 0x457   : > { %v1322_v16 = vpack.c.bf16 %v1314_v26, %v1313_v4  ;;  %v1295_v7 = vmul.f32 %v2993_v31, %v1275_v25 }
 0x458   : > { %v2304_v37 = vpop.eup %2303 }
 0x459   : > { %v1276_v52 = vmul.f32 %v2304_v37, %v2976_v49  ;;  %2198 = vmatmul.mubr.msk.bf16.gmra.mrb[44].mxu0 %vm1108_vm3, %v1322_v16  ;;  %v1315_v59 = vadd.f32 %v3000_v63, %v1295_v7 }
 0x45a   : > { %2201 = vmatprep.mubr.msk.bf16.mxu0 %vm2342_vm0, %v2341_v1 }
 0x45b   : > { %v1296_v9 = vmul.f32 %v2993_v31, %v1276_v52 }
 0x45c   : > { %v2306_v50 = vpop.eup %2305 }
 0x45d   : > { %v1316_v10 = vadd.f32 %v3000_v63, %v1296_v9  ;;  %v1277_v33 = vmul.f32 %v2306_v50, %v2983_v35  ;;  %v2231_v9 = vld [vmem:[%s3401_s13] ss:$8 sps:$4 sm:$0xff]   ;;  %v2233_v50 = vld [vmem:[%s3401_s13 + $0x4] ss:$8 sps:$4 sm:$0xff]  }
 0x45e   : > { %1784 = vmatprep.subr.bf16.mxu1 %v2233_v50 }
 0x45f   : > { %v1323_v36 = vpack.c.bf16 %v1316_v10, %v1315_v59  ;;  %v1297_v44 = vmul.f32 %v2993_v31, %v1277_v33  ;;  %v2236_v59 = vld [vmem:[%s3401_s13 + $0x14] ss:$8 sps:$4 sm:$0xff]   ;;  %1785 = vmatpush1.bf16.msra.mxu1 %v2231_v9  ;;  %v2234_v10 = vld [vmem:[%s3401_s13 + $0x10] ss:$8 sps:$4 sm:$0xff]   ;;  %v2239_v33 = vld [vmem:[%s3401_s13 + $0x24] ss:$8 sps:$4 sm:$0xff]  }
 0x460   : > { %1786 = vmatprep.subr.bf16.mxu1 %v2236_v59 }
 0x461   : > { %2202 = vmatmul.mubr.msk.bf16.gmra.mrb[48].mxu0 %vm1108_vm3, %v1323_v36  ;;  %v1317_v49 = vadd.f32 %v3000_v63, %v1297_v44  ;;  %v2237_v36 = vld [vmem:[%s3401_s13 + $0x20] ss:$8 sps:$4 sm:$0xff]   ;;  %v2242_v44 = vld [vmem:[%s3401_s13 + $0x34] ss:$8 sps:$4 sm:$0xff]  }
 0x462   : > { %2205 = vmatprep.mubr.msk.bf16.mxu0 %vm2342_vm0, %v2341_v1 }
 0x463   : > { %v1324_v56 = vpack.c.bf16 %v1317_v49, %v1317_v49  ;;  %1787 = vmatpush1.bf16.msra.mxu1 %v2234_v10  ;;  %v2240_v49 = vld [vmem:[%s3401_s13 + $0x30] ss:$8 sps:$4 sm:$0xff]  }
 0x464   : > { %1788 = vmatprep.subr.bf16.mxu1 %v2239_v33 }
 0x467   : > { %1789 = vmatpush1.bf16.msra.mxu1 %v2237_v36  ;;  %v2344_v36 = vmov 0  }
 0x468   : > { %1790 = vmatprep.subr.bf16.mxu1 %v2242_v44  ;;  %1816 = vmatprep.mubr.bf16.mxu1 %v2344_v36 }
 0x469   : > { %2206 = vmatmul.mubr.msk.bf16.gmra.mrb[52].mxu0 %vm1108_vm3, %v1324_v56  ;;  %v2245_v56 = vld [vmem:[%s3401_s13 + $0x44] ss:$8 sps:$4 sm:$0xff]  }
 0x46b   : > { %1791 = vmatpush1.bf16.msra.mxu1 %v2240_v49 }
 0x46c   : > { %1792 = vmatprep.subr.bf16.mxu1 %v2245_v56 }
 0x50c   : > { %v1419_v62 = vpop.f32.mrb[28].mxu0 }
 0x50d   : > { %v3060_v51 = vadd.f32 %v2010_v14, %v1419_v62  ;;  %v2183_v35 = vpop.f32.mrb[29].mxu0 }
 0x50e   : > { %v1422_v58 = vpop.f32.mrb[30].mxu0 }
 0x50f   : > { %v1473_v31 = vmax.f32 %v3060_v51, 0.0  ;;  %v3063_v12 = vadd.f32 %v2010_v14, %v1422_v58  ;;  %v2184_v17 = vpop.f32.mrb[31].mxu0 }
 0x511   : > { %v1474_v1 = vmax.f32 %v3063_v12, 0.0  ;;  %1486 = vadd.xlane.f32.xlu0 %v1473_v31 }
 0x513   : > { %1488 = vadd.xlane.f32.xlu1 %v1474_v1 }
 0x514   : > { %v1427_v63 = vpop.f32.mrb[32].mxu0 }
 0x515   : > { %v3070_v22 = vadd.f32 %v2010_v14, %v1427_v63  ;;  %v2187_v5 = vpop.f32.mrb[33].mxu0 }
 0x516   : > { %v1430_v23 = vpop.f32.mrb[34].mxu0 }
 0x517   : > { %v1475_v32 = vmax.f32 %v3070_v22, 0.0  ;;  %v3073_v0 = vadd.f32 %v2010_v14, %v1430_v23  ;;  %v2188_v3 = vpop.f32.mrb[35].mxu0 }
 0x519   : > { %v1476_v54 = vmax.f32 %v3073_v0, 0.0  ;;  %1490 = vadd.xlane.f32.xlu0 %v1475_v32 }
 0x51b   : > { %1492 = vadd.xlane.f32.xlu1 %v1476_v54 }
 0x51c   : > { %v1435_v27 = vpop.f32.mrb[36].mxu0 }
 0x51d   : > { %v3080_v61 = vadd.f32 %v2010_v14, %v1435_v27  ;;  %v2191_v8 = vpop.f32.mrb[37].mxu0 }
 0x51e   : > { %v1438_v29 = vpop.f32.mrb[38].mxu0 }
 0x51f   : > { %v1477_v40 = vmax.f32 %v3080_v61, 0.0  ;;  %v3083_v53 = vadd.f32 %v2010_v14, %v1438_v29  ;;  %v2192_v42 = vpop.f32.mrb[39].mxu0 }
 0x521   : > { %v1478_v19 = vmax.f32 %v3083_v53, 0.0  ;;  %1494 = vadd.xlane.f32.xlu0 %v1477_v40 }
 0x523   : > { %1496 = vadd.xlane.f32.xlu1 %v1478_v19 }
 0x524   : > { %v1443_v43 = vpop.f32.mrb[40].mxu0 }
 0x525   : > { %v3090_v20 = vadd.f32 %v2010_v14, %v1443_v43  ;;  %v2195_v30 = vpop.f32.mrb[41].mxu0 }
 0x526   : > { %v1446_v6 = vpop.f32.mrb[42].mxu0 }
 0x527   : > { %v1479_v34 = vmax.f32 %v3090_v20, 0.0  ;;  %v3093_v47 = vadd.f32 %v2010_v14, %v1446_v6  ;;  %v2196_v13 = vpop.f32.mrb[43].mxu0 }
 0x529   : > { %v1480_v15 = vmax.f32 %v3093_v47, 0.0  ;;  %1498 = vadd.xlane.f32.xlu0 %v1479_v34 }
 0x52b   : > { %1500 = vadd.xlane.f32.xlu1 %v1480_v15 }
 0x52c   : > { %v1451_v11 = vpop.f32.mrb[44].mxu0 }
 0x52d   : > { %v3100_v48 = vadd.f32 %v2010_v14, %v1451_v11  ;;  %v2199_v39 = vpop.f32.mrb[45].mxu0 }
 0x52e   : > { %v1454_v24 = vpop.f32.mrb[46].mxu0 }
 0x52f   : > { %v1481_v55 = vmax.f32 %v3100_v48, 0.0  ;;  %v3103_v57 = vadd.f32 %v2010_v14, %v1454_v24  ;;  %v2200_v45 = vpop.f32.mrb[47].mxu0 }
 0x531   : > { %v1482_v60 = vmax.f32 %v3103_v57, 0.0  ;;  %1502 = vadd.xlane.f32.xlu0 %v1481_v55  ;;  %v2254_v57 = vld [vmem:[%s3401_s13 + $0x74] ss:$8 sps:$4 sm:$0xff]  }
 0x533   : > { %1504 = vadd.xlane.f32.xlu1 %v1482_v60 }
 0x534   : > { %v1459_v38 = vpop.f32.mrb[48].mxu0 }
 0x535   : > { %v3110_v41 = vadd.f32 %v2010_v14, %v1459_v38  ;;  %v2203_v28 = vpop.f32.mrb[49].mxu0 }
 0x536   : > { %v1462_v2 = vpop.f32.mrb[50].mxu0  ;;  %v2248_v28 = vld [vmem:[%s3401_s13 + $0x54] ss:$8 sps:$4 sm:$0xff]  }
 0x537   : > { %v1483_v21 = vmax.f32 %v3110_v41, 0.0  ;;  %v3113_v18 = vadd.f32 %v2010_v14, %v1462_v2  ;;  %v2204_v46 = vpop.f32.mrb[51].mxu0 }
 0x538   : > { %v2251_v46 = vld [vmem:[%s3401_s13 + $0x64] ss:$8 sps:$4 sm:$0xff]  }
 0x539   : > { %v1484_v25 = vmax.f32 %v3113_v18, 0.0  ;;  %1506 = vadd.xlane.f32.xlu0 %v1483_v21 }
 0x53b   : > { %1508 = vadd.xlane.f32.xlu1 %v1484_v25 }
 0x53c   : > { %v1467_v4 = vpop.f32.mrb[52].mxu0 }
 0x53d   : > { %v3120_v26 = vadd.f32 %v2010_v14, %v1467_v4  ;;  %v2207_v16 = vpop.f32.mrb[53].mxu0  ;;  %v2243_v14 = vld [vmem:[%s3401_s13 + $0x40] ss:$8 sps:$4 sm:$0xff]  }
 0x53e   : > { %v1470_v37 = vpop.f32.mrb[54].mxu0  ;;  %1793 = vmatpush1.bf16.msra.mxu1 %v2243_v14 }
 0x53f   : > { %v1485_v52 = vmax.f32 %v3120_v26, 0.0  ;;  %v2208_v7 = vpop.f32.mrb[55].mxu0  ;;  %1794 = vmatprep.subr.bf16.mxu1 %v2248_v28  ;;  %v2249_v37 = vld [vmem:[%s3401_s13 + $0x60] ss:$8 sps:$4 sm:$0xff]  }
 0x540   : > { %v2252_v7 = vld [vmem:[%s3401_s13 + $0x70] ss:$8 sps:$4 sm:$0xff]  }
 0x541   : > { %1510 = vadd.xlane.f32.xlu0 %v1485_v52 }
 0x59e   : > { %v1487_v62 = vpop.xlane.xlu0 %1486 }
 0x59f   : > { %v1512_v35 = vmul.f32 0.0078125, %v1487_v62 }
 0x5a0   : > { %v1489_v58 = vpop.xlane.xlu1 %1488 }
 0x5a1   : > { %v3157_v17 = vsub.f32 %v1473_v31, %v1512_v35  ;;  %v1513_v63 = vmul.f32 0.0078125, %v1489_v58 }
 0x5a3   : > { %v3161_v5 = vsub.f32 %v1474_v1, %v1513_v63  ;;  %v1538_v23 = vmul.f32 %v3157_v17, %v3157_v17 }
 0x5a5   : > { %1551 = vadd.xlane.f32.xlu1 %v1538_v23  ;;  %v1539_v3 = vmul.f32 %v3161_v5, %v3161_v5 }
 0x5a6   : > { %v1491_v27 = vpop.xlane.xlu0 %1490 }
 0x5a7   : > { %v1514_v8 = vmul.f32 0.0078125, %v1491_v27  ;;  %1553 = vadd.xlane.f32.xlu0 %v1539_v3 }
 0x5a8   : > { %v1493_v29 = vpop.xlane.xlu1 %1492 }
 0x5a9   : > { %v3169_v51 = vsub.f32 %v1475_v32, %v1514_v8  ;;  %v1515_v31 = vmul.f32 0.0078125, %v1493_v29  ;;  %v3255_v29 = vld [vmem:[%s3399_s11] ss:$0 sm:$0xff] }
 0x5ab   : > { %v3173_v12 = vsub.f32 %v1476_v54, %v1515_v31  ;;  %v1540_v1 = vmul.f32 %v3169_v51, %v3169_v51 }
 0x5ad   : > { %1555 = vadd.xlane.f32.xlu1 %v1540_v1  ;;  %v1541_v42 = vmul.f32 %v3173_v12, %v3173_v12 }
 0x5ae   : > { %v1495_v43 = vpop.xlane.xlu0 %1494 }
 0x5af   : > { %v1516_v30 = vmul.f32 0.0078125, %v1495_v43  ;;  %1557 = vadd.xlane.f32.xlu0 %v1541_v42 }
 0x5b0   : > { %v1497_v6 = vpop.xlane.xlu1 %1496 }
 0x5b1   : > { %v3181_v22 = vsub.f32 %v1477_v40, %v1516_v30  ;;  %v1517_v32 = vmul.f32 0.0078125, %v1497_v6 }
 0x5b3   : > { %v3185_v0 = vsub.f32 %v1478_v19, %v1517_v32  ;;  %v1542_v54 = vmul.f32 %v3181_v22, %v3181_v22 }
 0x5b5   : > { %1559 = vadd.xlane.f32.xlu1 %v1542_v54  ;;  %v1543_v13 = vmul.f32 %v3185_v0, %v3185_v0 }
 0x5b6   : > { %v1499_v11 = vpop.xlane.xlu0 %1498 }
 0x5b7   : > { %v1518_v39 = vmul.f32 0.0078125, %v1499_v11  ;;  %1561 = vadd.xlane.f32.xlu0 %v1543_v13  ;;  %v3263_v11 = vld [vmem:[%s3400_s12] ss:$0 sm:$0xff] }
 0x5b8   : > { %v1501_v24 = vpop.xlane.xlu1 %1500 }
 0x5b9   : > { %v3193_v61 = vsub.f32 %v1479_v34, %v1518_v39  ;;  %v1519_v40 = vmul.f32 0.0078125, %v1501_v24  ;;  %v2246_v34 = vld [vmem:[%s3401_s13 + $0x50] ss:$8 sps:$4 sm:$0xff]  }
 0x5ba   : > { %1795 = vmatpush1.bf16.msra.mxu1 %v2246_v34 }
 0x5bb   : > { %v3197_v53 = vsub.f32 %v1480_v15, %v1519_v40  ;;  %v1544_v19 = vmul.f32 %v3193_v61, %v3193_v61  ;;  %1796 = vmatprep.subr.bf16.mxu1 %v2251_v46 }
 0x5bd   : > { %1563 = vadd.xlane.f32.xlu1 %v1544_v19  ;;  %v1545_v45 = vmul.f32 %v3197_v53, %v3197_v53 }
 0x5be   : > { %v1503_v38 = vpop.xlane.xlu0 %1502  ;;  %1797 = vmatpush1.bf16.msra.mxu1 %v2249_v37 }
 0x5bf   : > { %v1520_v20 = vmul.f32 0.0078125, %v1503_v38  ;;  %1565 = vadd.xlane.f32.xlu0 %v1545_v45  ;;  %1798 = vmatprep.subr.bf16.mxu1 %v2254_v57 }
 0x5c0   : > { %v1505_v47 = vpop.xlane.xlu1 %1504 }
 0x5c1   : > { %v3211_v15 = vsub.f32 %v1481_v55, %v1520_v20  ;;  %v1521_v2 = vmul.f32 0.0078125, %v1505_v47 }
 0x5c2   : > { %1799 = vmatpush1.bf16.msra.mxu1 %v2252_v7 }
 0x5c3   : > { %v3218_v4 = vsub.f32 %v1482_v60, %v1521_v2  ;;  %v1546_v16 = vmul.f32 %v3211_v15, %v3211_v15 }
 0x5c5   : > { %1567 = vadd.xlane.f32.xlu1 %v1546_v16  ;;  %v1547_v48 = vmul.f32 %v3218_v4, %v3218_v4 }
 0x5c6   : > { %v1507_v55 = vpop.xlane.xlu0 %1506 }
 0x5c7   : > { %v1522_v60 = vmul.f32 0.0078125, %v1507_v55  ;;  %1569 = vadd.xlane.f32.xlu0 %v1547_v48 }
 0x5c8   : > { %v1509_v9 = vpop.xlane.xlu1 %1508 }
 0x5c9   : > { %v3235_v50 = vsub.f32 %v1483_v21, %v1522_v60  ;;  %v1523_v59 = vmul.f32 0.0078125, %v1509_v9 }
 0x5cb   : > { %v3239_v10 = vsub.f32 %v1484_v25, %v1523_v59  ;;  %v1548_v33 = vmul.f32 %v3235_v50, %v3235_v50 }
 0x5cd   : > { %1571 = vadd.xlane.f32.xlu1 %v1548_v33  ;;  %v1549_v44 = vmul.f32 %v3239_v10, %v3239_v10 }
 0x5ce   : > { %v1511_v49 = vpop.xlane.xlu0 %1510 }
 0x5cf   : > { %v1524_v41 = vmul.f32 0.0078125, %v1511_v49  ;;  %1573 = vadd.xlane.f32.xlu0 %v1549_v44 }
 0x5d1   : > { %v3248_v21 = vsub.f32 %v1485_v52, %v1524_v41 }
 0x5d3   : > { %v1550_v18 = vmul.f32 %v3248_v21, %v3248_v21 }
 0x5d5   : > { %1575 = vadd.xlane.f32.xlu1 %v1550_v18 }
 0x632   : > { %v1552_v25 = vpop.xlane.xlu1 %1551 }
 0x633   : > { %v1577_v56 = vmul.f32 0.0078125, %v1552_v25 }
 0x634   : > { %v1554_v14 = vpop.xlane.xlu0 %1553 }
 0x635   : > { %v1590_v62 = vadd.f32 1e-05, %v1577_v56  ;;  %v1578_v35 = vmul.f32 0.0078125, %v1554_v14 }
 0x637   : > { %2307 = vrsqrt.f32 %v1590_v62  ;;  %v1591_v58 = vadd.f32 1e-05, %v1578_v35 }
 0x639   : > { %2309 = vrsqrt.f32 %v1591_v58 }
 0x63a   : > { %v1556_v63 = vpop.xlane.xlu1 %1555 }
 0x63b   : > { %v1579_v23 = vmul.f32 0.0078125, %v1556_v63 }
 0x63c   : > { %v1558_v3 = vpop.xlane.xlu0 %1557 }
 0x63d   : > { %v1592_v27 = vadd.f32 1e-05, %v1579_v23  ;;  %v1580_v8 = vmul.f32 0.0078125, %v1558_v3 }
 0x63f   : > { %2311 = vrsqrt.f32 %v1592_v27  ;;  %v1593_v26 = vadd.f32 1e-05, %v1580_v8 }
 0x641   : > { %v2308_v52 = vpop.eup %2307  ;;  %2313 = vrsqrt.f32 %v1593_v26 }
 0x642   : > { %v1616_v31 = vmul.f32 %v2308_v52, %v3157_v17  ;;  %v1560_v1 = vpop.xlane.xlu1 %1559 }
 0x643   : > { %v2310_v42 = vpop.eup %2309  ;;  %v1581_v43 = vmul.f32 0.0078125, %v1560_v1 }
 0x644   : > { %v1636_v30 = vmul.f32 %v3255_v29, %v1616_v31  ;;  %v1617_v6 = vmul.f32 %v2310_v42, %v3161_v5  ;;  %v1562_v32 = vpop.xlane.xlu0 %1561 }
 0x645   : > { %v1594_v54 = vadd.f32 1e-05, %v1581_v43  ;;  %v1582_v13 = vmul.f32 0.0078125, %v1562_v32 }
 0x646   : > { %v1637_v39 = vmul.f32 %v3255_v29, %v1617_v6  ;;  %v1656_v17 = vadd.f32 %v3263_v11, %v1636_v30 }
 0x647   : > { %2315 = vrsqrt.f32 %v1594_v54  ;;  %v1595_v24 = vadd.f32 1e-05, %v1582_v13 }
 0x648   : > { %v1657_v40 = vadd.f32 %v3263_v11, %v1637_v39 }
 0x649   : > { %v2312_v19 = vpop.eup %2311  ;;  %2317 = vrsqrt.f32 %v1595_v24 }
 0x64a   : > { %v1564_v45 = vpop.xlane.xlu1 %1563  ;;  %v1669_v5 = vpack.c.bf16 %v1657_v40, %v1656_v17  ;;  %v1618_v38 = vmul.f32 %v2312_v19, %v3169_v51 }
 0x64b   : > { %v2314_v28 = vpop.eup %2313  ;;  %v1583_v20 = vmul.f32 0.0078125, %v1564_v45 }
 0x64c   : > { %1817 = vmatmul.mubr.bf16.vlgmr.msra.gmra.mrb[28].mxu1 %v1669_v5  ;;  %v1566_v34 = vpop.xlane.xlu0 %1565  ;;  %v1619_v47 = vmul.f32 %v2314_v28, %v3173_v12  ;;  %v1638_v2 = vmul.f32 %v3255_v29, %v1618_v38 }
 0x64d   : > { %v1596_v46 = vadd.f32 1e-05, %v1583_v20  ;;  %v1584_v16 = vmul.f32 0.0078125, %v1566_v34  ;;  %1826 = vmatprep.mubr.bf16.mxu1 %v2344_v36 }
 0x64e   : > { %v1639_v37 = vmul.f32 %v3255_v29, %v1619_v47  ;;  %v1658_v55 = vadd.f32 %v3263_v11, %v1638_v2 }
 0x64f   : > { %2319 = vrsqrt.f32 %v1596_v46  ;;  %v1597_v48 = vadd.f32 1e-05, %v1584_v16 }
 0x650   : > { %v1659_v51 = vadd.f32 %v3263_v11, %v1639_v37 }
 0x651   : > { %v2316_v57 = vpop.eup %2315  ;;  %2321 = vrsqrt.f32 %v1597_v48  ;;  %v1694_v48 = vlaneseq }
 0x652   : > { %v1568_v60 = vpop.xlane.xlu1 %1567  ;;  %v1670_v7 = vpack.c.bf16 %v1659_v51, %v1658_v55  ;;  %v1620_v12 = vmul.f32 %v2316_v57, %v3181_v22  ;;  %v1692_v57 = vld [vmem:[%s3402_s14] sm:$0x3] }
 0x653   : > { %v2318_v9 = vpop.eup %2317  ;;  %v1585_v59 = vmul.f32 0.0078125, %v1568_v60  ;;  %v1695_v55 = vshrl.u32 %v1694_v48, 7 }
 0x654   : > { %1827 = vmatmul.mubr.bf16.gmra.mrb[32].mxu1 %v1670_v7  ;;  %v1570_v33 = vpop.xlane.xlu0 %1569  ;;  %v1621_v44 = vmul.f32 %v2318_v9, %v3185_v0  ;;  %v1640_v49 = vmul.f32 %v3255_v29, %v1620_v12 }
 0x655   : > { %v1598_v41 = vadd.f32 1e-05, %v1585_v59  ;;  %v1586_v18 = vmul.f32 0.0078125, %v1570_v33  ;;  %1836 = vmatprep.mubr.bf16.mxu1 %v2344_v36  ;;  %v1696_v51 = vsub.s32 0, %v1695_v55  ;;  %v1700_v60 = vsub.s32 1, %v1695_v55 }
 0x656   : > { %v1641_v25 = vmul.f32 %v3255_v29, %v1621_v44  ;;  %v1660_v14 = vadd.f32 %v3263_v11, %v1640_v49 }
 0x657   : > { %2323 = vrsqrt.f32 %v1598_v41  ;;  %v1599_v56 = vadd.f32 1e-05, %v1586_v18  ;;  %v3311_v7 = vrot.slane %v1692_v57, %v1696_v51 }
 0x658   : > { %v1661_v22 = vadd.f32 %v3263_v11, %v1641_v25 }
 0x659   : > { %v2320_v62 = vpop.eup %2319  ;;  %2325 = vrsqrt.f32 %v1599_v56 }
 0x65a   : > { %v1572_v35 = vpop.xlane.xlu1 %1571  ;;  %v1671_v58 = vpack.c.bf16 %v1661_v22, %v1660_v14  ;;  %v1622_v0 = vmul.f32 %v2320_v62, %v3193_v61 }
 0x65b   : > { %v2322_v63 = vpop.eup %2321  ;;  %v1587_v23 = vmul.f32 0.0078125, %v1572_v35 }
 0x65c   : > { %1837 = vmatmul.mubr.bf16.gmra.mrb[36].mxu1 %v1671_v58  ;;  %v1574_v3 = vpop.xlane.xlu0 %1573  ;;  %v1623_v27 = vmul.f32 %v2322_v63, %v3197_v53  ;;  %v1642_v8 = vmul.f32 %v3255_v29, %v1622_v0 }
 0x65d   : > { %v1600_v26 = vadd.f32 1e-05, %v1587_v23  ;;  %v1588_v52 = vmul.f32 0.0078125, %v1574_v3  ;;  %1846 = vmatprep.mubr.bf16.mxu1 %v2344_v36 }
 0x65e   : > { %v1643_v31 = vmul.f32 %v3255_v29, %v1623_v27  ;;  %v1662_v42 = vadd.f32 %v3263_v11, %v1642_v8 }
 0x65f   : > { %2327 = vrsqrt.f32 %v1600_v26  ;;  %v1601_v1 = vadd.f32 1e-05, %v1588_v52 }
 0x660   : > { %v1663_v61 = vadd.f32 %v3263_v11, %v1643_v31 }
 0x661   : > { %v2324_v43 = vpop.eup %2323  ;;  %2329 = vrsqrt.f32 %v1601_v1 }
 0x662   : > { %v1576_v30 = vpop.xlane.xlu1 %1575  ;;  %v1672_v6 = vpack.c.bf16 %v1663_v61, %v1662_v42  ;;  %v1624_v53 = vmul.f32 %v2324_v43, %v3211_v15 }
 0x663   : > { %v2326_v32 = vpop.eup %2325  ;;  %v1589_v54 = vmul.f32 0.0078125, %v1576_v30 }
 0x664   : > { %1847 = vmatmul.mubr.bf16.gmra.mrb[40].mxu1 %v1672_v6  ;;  %v1625_v13 = vmul.f32 %v2326_v32, %v3218_v4  ;;  %v1644_v39 = vmul.f32 %v3255_v29, %v1624_v53 }
 0x665   : > { %v1602_v24 = vadd.f32 1e-05, %v1589_v54  ;;  %1856 = vmatprep.mubr.bf16.mxu1 %v2344_v36 }
 0x666   : > { %v1645_v17 = vmul.f32 %v3255_v29, %v1625_v13  ;;  %v1664_v40 = vadd.f32 %v3263_v11, %v1644_v39 }
 0x667   : > { %2331 = vrsqrt.f32 %v1602_v24 }
 0x668   : > { %v1665_v19 = vadd.f32 %v3263_v11, %v1645_v17 }
 0x669   : > { %v2328_v45 = vpop.eup %2327 }
 0x66a   : > { %v1673_v5 = vpack.c.bf16 %v1665_v19, %v1664_v40  ;;  %v1626_v15 = vmul.f32 %v2328_v45, %v3235_v50 }
 0x66b   : > { %v2330_v38 = vpop.eup %2329 }
 0x66c   : > { %1857 = vmatmul.mubr.bf16.gmra.mrb[44].mxu1 %v1673_v5  ;;  %v1627_v4 = vmul.f32 %v2330_v38, %v3239_v10  ;;  %v1646_v28 = vmul.f32 %v3255_v29, %v1626_v15 }
 0x66d   : > { %1866 = vmatprep.mubr.bf16.mxu1 %v2344_v36 }
 0x66e   : > { %v1647_v20 = vmul.f32 %v3255_v29, %v1627_v4  ;;  %v1666_v34 = vadd.f32 %v3263_v11, %v1646_v28 }
 0x670   : > { %v1667_v47 = vadd.f32 %v3263_v11, %v1647_v20 }
 0x671   : > { %v2332_v2 = vpop.eup %2331 }
 0x672   : > { %v1674_v46 = vpack.c.bf16 %v1667_v47, %v1666_v34  ;;  %v1628_v16 = vmul.f32 %v2332_v2, %v3248_v21  ;;  %v3313_v21 = vrot.slane %v1692_v57, %v1700_v60 }
 0x674   : > { %1867 = vmatmul.mubr.bf16.gmra.mrb[48].mxu1 %v1674_v46  ;;  %v1648_v50 = vmul.f32 %v3255_v29, %v1628_v16 }
 0x675   : > { %1876 = vmatprep.mubr.bf16.mxu1 %v2344_v36 }
 0x676   : > { %v1668_v10 = vadd.f32 %v3263_v11, %v1648_v50 }
 0x678   : > { %v1675_v37 = vpack.c.bf16 %v1668_v10, %v1668_v10 }
 0x67c   : > { %1877 = vmatmul.mubr.bf16.gmra.mrb[52].mxu1 %v1675_v37 }
 0x71f   : > { %v1818_v36 = vpop.f32.mrb[28].mxu1 }
 0x720   : > { %v1819_v29 = vadd.f32 %v1818_v36, %v3311_v7  ;;  %v1820_v11 = vpop.f32.mrb[29].mxu1 }
 0x721   : > { %v1821_v12 = vadd.f32 %v1820_v11, %v3313_v21  ;;  %v1822_v9 = vpop.f32.mrb[30].mxu1 }
 0x722   : > { %1885 = vst [vmem:[%s3318_s19] sm:$0xff] %v1819_v29  ;;  %v1823_v59 = vadd.f32 %v1822_v9, %v3311_v7  ;;  %v1824_v33 = vpop.f32.mrb[31].mxu1 }
 0x723   : > { %1887 = vst.msk [vmem:[%s3318_s19 + $0x8] sm:$0xff] %vm1886_vm4, %v1821_v12  ;;  %v1825_v44 = vadd.f32 %v1824_v33, %v3313_v21 }
 0x724   : > { %1888 = vst [vmem:[%s3318_s19 + $0x10] sm:$0xff] %v1823_v59 }
 0x725   : > { %1889 = vst.msk [vmem:[%s3318_s19 + $0x18] sm:$0xff] %vm1886_vm4, %v1825_v44 }
 0x727   : > { %v1828_v49 = vpop.f32.mrb[32].mxu1 }
 0x728   : > { %v1829_v41 = vadd.f32 %v1828_v49, %v3311_v7  ;;  %v1830_v18 = vpop.f32.mrb[33].mxu1 }
 0x729   : > { %v1831_v25 = vadd.f32 %v1830_v18, %v3313_v21  ;;  %v1832_v56 = vpop.f32.mrb[34].mxu1 }
 0x72a   : > { %1890 = vst [vmem:[%s3318_s19 + $0x20] sm:$0xff] %v1829_v41  ;;  %v1833_v14 = vadd.f32 %v1832_v56, %v3311_v7  ;;  %v1834_v22 = vpop.f32.mrb[35].mxu1 }
 0x72b   : > { %1891 = vst.msk [vmem:[%s3318_s19 + $0x28] sm:$0xff] %vm1886_vm4, %v1831_v25  ;;  %v1835_v62 = vadd.f32 %v1834_v22, %v3313_v21 }
 0x72c   : > { %1892 = vst [vmem:[%s3318_s19 + $0x30] sm:$0xff] %v1833_v14 }
 0x72d   : > { %1893 = vst.msk [vmem:[%s3318_s19 + $0x38] sm:$0xff] %vm1886_vm4, %v1835_v62 }
 0x72f   : > { %v1838_v35 = vpop.f32.mrb[36].mxu1 }
 0x730   : > { %v1839_v58 = vadd.f32 %v1838_v35, %v3311_v7  ;;  %v1840_v0 = vpop.f32.mrb[37].mxu1 }
 0x731   : > { %v1841_v63 = vadd.f32 %v1840_v0, %v3313_v21  ;;  %v1842_v23 = vpop.f32.mrb[38].mxu1 }
 0x732   : > { %1894 = vst [vmem:[%s3318_s19 + $0x40] sm:$0xff] %v1839_v58  ;;  %v1843_v3 = vadd.f32 %v1842_v23, %v3311_v7  ;;  %v1844_v27 = vpop.f32.mrb[39].mxu1 }
 0x733   : > { %1895 = vst.msk [vmem:[%s3318_s19 + $0x48] sm:$0xff] %vm1886_vm4, %v1841_v63  ;;  %v1845_v8 = vadd.f32 %v1844_v27, %v3313_v21 }
 0x734   : > { %1896 = vst [vmem:[%s3318_s19 + $0x50] sm:$0xff] %v1843_v3 }
 0x735   : > { %1897 = vst.msk [vmem:[%s3318_s19 + $0x58] sm:$0xff] %vm1886_vm4, %v1845_v8 }
 0x737   : > { %v1848_v26 = vpop.f32.mrb[40].mxu1 }
 0x738   : > { %v1849_v52 = vadd.f32 %v1848_v26, %v3311_v7  ;;  %v1850_v31 = vpop.f32.mrb[41].mxu1 }
 0x739   : > { %v1851_v1 = vadd.f32 %v1850_v31, %v3313_v21  ;;  %v1852_v42 = vpop.f32.mrb[42].mxu1 }
 0x73a   : > { %1898 = vst [vmem:[%s3318_s19 + $0x60] sm:$0xff] %v1849_v52  ;;  %v1853_v61 = vadd.f32 %v1852_v42, %v3311_v7  ;;  %v1854_v43 = vpop.f32.mrb[43].mxu1 }
 0x73b   : > { %1899 = vst.msk [vmem:[%s3318_s19 + $0x68] sm:$0xff] %vm1886_vm4, %v1851_v1  ;;  %v1855_v30 = vadd.f32 %v1854_v43, %v3313_v21 }
 0x73c   : > { %1900 = vst [vmem:[%s3318_s19 + $0x70] sm:$0xff] %v1853_v61 }
 0x73d   : > { %1901 = vst.msk [vmem:[%s3318_s19 + $0x78] sm:$0xff] %vm1886_vm4, %v1855_v30 }
 0x73f   : > { %v1858_v6 = vpop.f32.mrb[44].mxu1 }
 0x740   : > { %v1859_v53 = vadd.f32 %v1858_v6, %v3311_v7  ;;  %v1860_v32 = vpop.f32.mrb[45].mxu1 }
 0x741   : > { %v1861_v54 = vadd.f32 %v1860_v32, %v3313_v21  ;;  %v1862_v13 = vpop.f32.mrb[46].mxu1 }
 0x742   : > { %1902 = vst [vmem:[%s3318_s19 + $0x80] sm:$0xff] %v1859_v53  ;;  %v1863_v39 = vadd.f32 %v1862_v13, %v3311_v7  ;;  %v1864_v24 = vpop.f32.mrb[47].mxu1 }
 0x743   : > { %1903 = vst.msk [vmem:[%s3318_s19 + $0x88] sm:$0xff] %vm1886_vm4, %v1861_v54  ;;  %v1865_v17 = vadd.f32 %v1864_v24, %v3313_v21 }
 0x744   : > { %1904 = vst [vmem:[%s3318_s19 + $0x90] sm:$0xff] %v1863_v39 }
 0x745   : > { %1905 = vst.msk [vmem:[%s3318_s19 + $0x98] sm:$0xff] %vm1886_vm4, %v1865_v17 }
 0x747   : > { %v1868_v40 = vpop.f32.mrb[48].mxu1 }
 0x748   : > { %v1869_v19 = vadd.f32 %v1868_v40, %v3311_v7  ;;  %v1870_v45 = vpop.f32.mrb[49].mxu1 }
 0x749   : > { %v1871_v5 = vadd.f32 %v1870_v45, %v3313_v21  ;;  %v1872_v15 = vpop.f32.mrb[50].mxu1 }
 0x74a   : > { %1906 = vst [vmem:[%s3318_s19 + $0xa0] sm:$0xff] %v1869_v19  ;;  %v1873_v38 = vadd.f32 %v1872_v15, %v3311_v7  ;;  %v1874_v4 = vpop.f32.mrb[51].mxu1 }
 0x74b   : > { %1907 = vst.msk [vmem:[%s3318_s19 + $0xa8] sm:$0xff] %vm1886_vm4, %v1871_v5  ;;  %v1875_v28 = vadd.f32 %v1874_v4, %v3313_v21 }
 0x74c   : > { %1908 = vst [vmem:[%s3318_s19 + $0xb0] sm:$0xff] %v1873_v38 }
 0x74d   : > { %1909 = vst.msk [vmem:[%s3318_s19 + $0xb8] sm:$0xff] %vm1886_vm4, %v1875_v28 }
 0x74f   : > { %v1878_v20 = vpop.f32.mrb[52].mxu1 }
 0x750   : > { %v1879_v34 = vadd.f32 %v1878_v20, %v3311_v7  ;;  %v1880_v47 = vpop.f32.mrb[53].mxu1 }
 0x751   : > { %v1881_v2 = vadd.f32 %v1880_v47, %v3313_v21  ;;  %v1882_v46 = vpop.f32.mrb[54].mxu1 }
 0x752   : > { %1910 = vst [vmem:[%s3318_s19 + $0xc0] sm:$0xff] %v1879_v34  ;;  %v1883_v16 = vpop.f32.mrb[55].mxu1 }
 0x753   : > { %1911 = vst.msk [vmem:[%s3318_s19 + $0xc8] sm:$0xff] %vm1886_vm4, %v1881_v2 }
 0x754 PF: > { %s25_s18 = sadd.s32 1, %s2339_s18  }
 0x755   : > { %p22_p4 = scmp.ge.s32.totalorder %s25_s18, 4  }
 0x757   :  { %24 = sbr.rel (!%p22_p4) target bundleno = 1 (0x1), region = 110 }

</bundles_post_ra>
